<compile_context>
chip_gen: v6e
topology: v6e:2x2x1
jax: 0.10.0
libtpu: 0.0.40
codegen_flags: <defaults>
</compile_context>

<pallas_src>
import math

import numpy as np

import jax
import jax.numpy as jnp
from jax import lax
from jax.experimental import pallas as pl
from jax.experimental.pallas import tpu as pltpu

EPS = 1e-5


# ----------------------------------------------------------------------------- wrapper glue


def _row_toeplitz(w_g_hwio, W):
    """Fold a (3, 3, C, Cout) HWIO weight slice into a (3*W*C, W*Cout) row-im2col matrix.

    With A[h, kh*W*C + w'*C + c] = relu(bn(x))[h + kh - 1, w', c] (zero rows outside [0, H)),
    out[h, w*Cout + o] = sum_k A[h, k] * T[k, w*Cout + o] reproduces the 3x3 conv with
    padding=1 (the W-direction zero padding is folded into the zeros of T).
    """
    KH, KW, C, Cout = w_g_hwio.shape
    T = jnp.zeros((KH, W, C, W, Cout), w_g_hwio.dtype)
    ow = np.arange(W)
    for kw in range(KW):
        src = ow + kw - 1                      # source column feeding output column ow
        m = (src >= 0) & (src < W)
        # target T[:, src, :, ow, :]  (advanced-index result shape: (n_valid, KH, C, Cout))
        T = T.at[:, src[m], :, ow[m], :].set(w_g_hwio[:, kw, :, :][None])
    return T.reshape(KH * W * C, W * Cout)


def _padded_channels(W, C):
    """Smallest C' >= C with (W*C') % 128 == 0 (lane-dense slab)."""
    step = 128 // math.gcd(W, 128)
    return ((C + step - 1) // step) * step


def _pick_bn(N, H, target_rows=256):
    """Images per grid step: aim for Bn*H ~ 256 MXU rows, Bn must divide N."""
    bn = min(N, max(1, target_rows // H))
    while N % bn != 0:
        bn -= 1
    return max(bn, 1)


def _group_stats(slab, H, W, C):
    """Training-mode BatchNorm2d batch stats (biased variance) for a (N, H, W*C) slab."""
    N = slab.shape[0]
    g4 = slab.reshape(N, H, W, C).astype(jnp.float32)
    mean = jnp.mean(g4, axis=(0, 1, 2))
    var = jnp.mean(jnp.square(g4 - mean), axis=(0, 1, 2))
    return mean, var


def _pad1(v, n):
    return v if v.shape[0] == n else jnp.concatenate(
        [v, jnp.zeros((n - v.shape[0],), v.dtype)])


def _vmem_cap_bytes():
    try:
        phys = int(pltpu.get_tpu_info().vmem_capacity_bytes)
        return min(64 << 20, (phys * 3) // 4)      # 48 MiB on v7x, 64 MiB on v5e/v6e
    except Exception:
        return 64 << 20


def _vmem_limit_bytes(stored_c, groups, Bn, H, W, Cout, mm_dtype, store_dtype):
    mm = jnp.dtype(mm_dtype).itemsize
    M, WO = Bn * H, W * Cout
    b = 0
    for C, g in zip(stored_c, groups):
        WC = W * C
        it = jnp.dtype(g.dtype).itemsize
        b += 2 * Bn * H * WC * it                   # x block (double-buffered)
        b += 2 * 3 * WC * WO * mm                   # Toeplitz weight block
        b += 2 * 2 * WC * 4                         # packed scale/shift
        b += M * 3 * WC * mm                        # A scratch (mm_dtype)
    b += 2 * WO * 4                                 # bias
    b += 2 * M * WO * jnp.dtype(store_dtype).itemsize   # output block
    b += M * WO * 4                                 # f32 accumulator scratch
    return int(min(max(2 * b + (4 << 20), 24 << 20), _vmem_cap_bytes()))


# ----------------------------------------------------------------------------- kernel


def _make_layer_kernel(G, Bn, H, W, Cout, channels, mm_dtype):
    """Fused BN + ReLU + 3x3 conv over G dense-connected groups, Bn images per grid step."""
    M = Bn * H
    WO = W * Cout

    def kernel(*refs):
        xs = refs[0:G]                    # each (Bn, H, W*C_g)  lane-dense feature group
        ts = refs[G:2 * G]                # each (3*W*C_g, W*Cout)  row-Toeplitz weights
        sss = refs[2 * G:3 * G]           # each (2, W*C_g): row 0 = BN scale, row 1 = shift
        b_ref = refs[3 * G]               # (1, W*Cout)
        o_ref = refs[3 * G + 1]           # (Bn, H, W*Cout)
        acc_ref = refs[3 * G + 2]         # (Bn*H, W*Cout) f32 accumulator scratch
        a_scr = refs[3 * G + 3:]          # each (Bn*H, 3*W*C_g) mm_dtype im2col scratch

        acc_ref[...] = jnp.zeros((M, WO), jnp.float32)

        for g in range(G):
            WC = W * channels[g]
            a = a_scr[g]
            scale = sss[g][0:1, :]                            # (1, W*C) f32
            shift = sss[g][1:2, :]
            zrow = jnp.zeros((1, WC), mm_dtype)

            for b in range(Bn):
                r0 = b * H
                # Fused BatchNorm + ReLU: f32 on the VPU, single cast to the matmul dtype.
                x = xs[g][b].astype(jnp.float32)              # (H, W*C) lane-dense
                y = jnp.maximum(x * scale + shift, 0.0).astype(mm_dtype)

                # Row im2col: A[h] = [y[h-1], y[h], y[h+1]], zero rows at per-image borders.
                a[r0:r0 + H, WC:2 * WC] = y
                a[r0:r0 + 1, 0:WC] = zrow
                a[r0 + 1:r0 + H, 0:WC] = y[:H - 1, :]
                a[r0:r0 + H - 1, 2 * WC:3 * WC] = y[1:, :]
                a[r0 + H - 1:r0 + H, 2 * WC:3 * WC] = zrow

            # One MXU matmul per group, M = Bn*H, f32 accumulation into VMEM scratch.
            acc_ref[...] += jnp.dot(a[...], ts[g][...],
                                    preferred_element_type=jnp.float32)

        bias = b_ref[...]                                     # (1, W*Cout)
        for b in range(Bn):
            o_ref[b] = (acc_ref[b * H:(b + 1) * H, :] + bias).astype(o_ref.dtype)

    return kernel


def _dense_layer(groups, stored_c, valid_c, stats, p, H, W, mm_dtype, store_dtype):
    """One conv_block: BN(cached training stats) -> ReLU -> Conv2d(3x3, pad=1), summed over groups."""
    G = len(groups)
    N = groups[0].shape[0]
    gamma, beta, w_hwio, bias = p["gamma"], p["beta"], p["w"], p["b"]
    Cout = w_hwio.shape[-1]
    WO = W * Cout
    Bn = _pick_bn(N, H)
    M = Bn * H

    # Per-group BN folding (from cached stats) + per-group Toeplitz weights (tiny tensors).
    t_mats, scsh = [], []
    off = 0
    for g in range(G):
        Cs, Cv = stored_c[g], valid_c[g]
        mean, var = stats[g]                                     # length Cs (pads: 0 / 0)
        gam = _pad1(gamma[off:off + Cv], Cs)                     # pad channels -> scale 0
        bet = _pad1(beta[off:off + Cv], Cs)                      # pad channels -> shift 0
        s = gam * lax.rsqrt(var + EPS)
        sh = bet - mean * s
        scsh.append(jnp.stack([jnp.tile(s, W), jnp.tile(sh, W)], axis=0))   # (2, W*Cs)
        w_g = w_hwio[:, :, off:off + Cv, :]
        if Cs != Cv:
            w_g = jnp.concatenate(
                [w_g, jnp.zeros((3, 3, Cs - Cv, Cout), w_g.dtype)], axis=2)
        t_mats.append(_row_toeplitz(w_g, W).astype(mm_dtype))
        off += Cv
    bias_t = jnp.tile(bias, W)[None, :]                          # (1, W*Cout)

    in_specs = (
        [pl.BlockSpec((Bn, H, W * C), lambda n: (n, 0, 0)) for C in stored_c]
        + [pl.BlockSpec((3 * W * C, WO), lambda n: (0, 0)) for C in stored_c]
        + [pl.BlockSpec((2, W * C), lambda n: (0, 0)) for C in stored_c]
        + [pl.BlockSpec((1, WO), lambda n: (0, 0))]
    )
    out_spec = pl.BlockSpec((Bn, H, WO), lambda n: (n, 0, 0))
    scratch = ([pltpu.VMEM((M, WO), jnp.float32)]                          # accumulator
               + [pltpu.VMEM((M, 3 * W * C), mm_dtype) for C in stored_c])  # im2col A

    kernel = _make_layer_kernel(G, Bn, H, W, Cout, tuple(stored_c), mm_dtype)
    return pl.pallas_call(
        kernel,
        out_shape=jax.ShapeDtypeStruct((N, H, WO), store_dtype),
        grid_spec=pltpu.PrefetchScalarGridSpec(
            num_scalar_prefetch=0,
            grid=(N // Bn,),
            in_specs=in_specs,
            out_specs=out_spec,
            scratch_shapes=scratch,
        ),
        compiler_params=pltpu.CompilerParams(
            dimension_semantics=("parallel",),
            vmem_limit_bytes=_vmem_limit_bytes(stored_c, groups, Bn, H, W, Cout,
                                               mm_dtype, store_dtype),
        ),
    )(*groups, *t_mats, *scsh, bias_t)


# ----------------------------------------------------------------------------- module API


def init_dense_block(key, num_convs, in_channels, out_channels):
    """Deterministic synthetic parameters matching the PyTorch module's shapes."""
    params = []
    for i in range(num_convs):
        in_c = in_channels + i * out_channels
        key, k1, k2, k3, k4 = jax.random.split(key, 5)
        w_oihw = 0.1 * jax.random.normal(k1, (out_channels, in_c, 3, 3), jnp.float32)
        params.append(dict(
            w=jnp.transpose(w_oihw, (2, 3, 1, 0)),                 # HWIO for NHWC conv
            b=0.05 * jax.random.normal(k2, (out_channels,), jnp.float32),
            gamma=1.0 + 0.1 * jax.random.normal(k3, (in_c,), jnp.float32),
            beta=0.05 * jax.random.normal(k4, (in_c,), jnp.float32),
        ))
    return params


def dense_block_forward(x_nchw, params, matmul_dtype=jnp.bfloat16):
    """DenseBlock.forward.  Feature groups stay as lane-dense (N, H, W*C) slabs (bf16 on the
    fast path); each layer reads all previous groups and sums per-group convs, so no
    intermediate concat hits HBM.  BN stats are computed once per group and cached."""
    N, C0, H, W = x_nchw.shape
    bf16 = jnp.dtype(matmul_dtype) == jnp.dtype(jnp.bfloat16)
    store_dtype = jnp.bfloat16 if bf16 else jnp.float32

    x_nhwc = jnp.transpose(x_nchw, (0, 2, 3, 1))                   # NCHW -> NHWC
    C0p = _padded_channels(W, C0)                                  # lane-dense input slab
    if C0p != C0:
        x_nhwc = jnp.concatenate(
            [x_nhwc, jnp.zeros((N, H, W, C0p - C0), x_nhwc.dtype)], axis=-1)

    groups = [x_nhwc.reshape(N, H, W * C0p)]                       # input group kept f32
    stored_c = [C0p]
    valid_c = [C0]
    stats = []                                                     # cached (mean, var) per group

    for p in params:
        if len(stats) < len(groups):                               # stats computed exactly once
            stats.append(_group_stats(groups[-1], H, W, stored_c[-1]))
        y = _dense_layer(groups, stored_c, valid_c, stats, p, H, W,
                         matmul_dtype, store_dtype)
        groups.append(y)                                           # (N, H, W*Cout) store_dtype
        Cout = p["w"].shape[-1]
        stored_c.append(Cout)
        valid_c.append(Cout)

    # Single concat at the end to produce the PyTorch-shaped output (drop pad channels).
    feats = [g.reshape(N, H, W, cs)[..., :cv].astype(jnp.float32)
             for g, cs, cv in zip(groups, stored_c, valid_c)]
    return jnp.transpose(jnp.concatenate(feats, axis=-1), (0, 3, 1, 2))   # NHWC -> NCHW


def reference_forward(x_nchw, params, eps=EPS):
    """Pure-JAX reference (same semantics) for verification."""
    x = jnp.transpose(x_nchw, (0, 2, 3, 1))
    for p in params:
        mean = jnp.mean(x, axis=(0, 1, 2))
        var = jnp.mean(jnp.square(x - mean), axis=(0, 1, 2))
        xhat = (x - mean) * lax.rsqrt(var + eps)
        y = jnp.maximum(xhat * p["gamma"] + p["beta"], 0.0)
        y = lax.conv_general_dilated(
            y, p["w"], window_strides=(1, 1), padding=((1, 1), (1, 1)),
            dimension_numbers=("NHWC", "HWIO", "NHWC")) + p["b"]
        x = jnp.concatenate([x, y], axis=-1)
    return jnp.transpose(x, (0, 3, 1, 2))


if __name__ == "__main__":
    num_convs, in_channels, out_channels = 2, 4, 8
    N, H, W = 2, 16, 16

    key = jax.random.PRNGKey(0)
    key, kx, kp = jax.random.split(key, 3)
    x = jax.random.normal(kx, (N, in_channels, H, W), jnp.float32)   # NCHW, like PyTorch
    params = init_dense_block(kp, num_convs, in_channels, out_channels)

    ref = jax.block_until_ready(reference_forward(x, params))

    fwd_f32 = jax.jit(lambda a, p: dense_block_forward(a, p, matmul_dtype=jnp.float32))
    fwd_bf16 = jax.jit(lambda a, p: dense_block_forward(a, p, matmul_dtype=jnp.bfloat16))
    out_f32 = jax.block_until_ready(fwd_f32(x, params))
    out_bf16 = jax.block_until_ready(fwd_bf16(x, params))

    expected_channels = in_channels + num_convs * out_channels
    assert out_f32.shape == (N, expected_channels, H, W), out_f32.shape
    assert out_bf16.shape == (N, expected_channels, H, W), out_bf16.shape
    # f32 MXU operands + f32 storage: strict-ish check; bf16 fast path: relaxed check.
    assert jnp.allclose(out_f32, ref, atol=1e-3, rtol=1e-3), \
        float(jnp.max(jnp.abs(out_f32 - ref)))
    assert jnp.allclose(out_bf16, ref, atol=5e-2, rtol=5e-2), \
        float(jnp.max(jnp.abs(out_bf16 - ref)))
    print("KERNEL_OK")
</pallas_src>

<mosaic_0001>
module attributes {stable_mosaic.version = 11 : i64} {
  func.func @kernel(%arg0: i32, %arg1: memref<2x16x128xf32, #tpu.memory_space<vmem>>, %arg2: memref<384x128xf32, #tpu.memory_space<vmem>>, %arg3: memref<2x128xf32, #tpu.memory_space<vmem>>, %arg4: memref<1x128xf32, #tpu.memory_space<vmem>>, %arg5: memref<2x16x128xf32, #tpu.memory_space<vmem>>, %arg6: memref<32x128xf32, #tpu.memory_space<vmem>>, %arg7: memref<32x384xf32, #tpu.memory_space<vmem>>) attributes {dimension_semantics = [#tpu.dimension_semantics<parallel>], iteration_bounds = array<i64: 1>, scalar_prefetch = 0 : i64, scratch_operands = 2 : i64, tpu.core_type = #tpu.core_type<tc>, window_params = [{transform_indices = @transform_0, window_bounds = array<i64: 2, 16, 128>}, {pipeline_mode = #tpu.pipeline_mode<synchronous>, transform_indices = @transform_1, window_bounds = array<i64: 384, 128>}, {pipeline_mode = #tpu.pipeline_mode<synchronous>, transform_indices = @transform_2, window_bounds = array<i64: 2, 128>}, {pipeline_mode = #tpu.pipeline_mode<synchronous>, transform_indices = @transform_3, window_bounds = array<i64: 1, 128>}, {transform_indices = @transform_4, window_bounds = array<i64: 2, 16, 128>}]} {
    %cst = arith.constant 0.000000e+00 : f32
    %0 = vector.broadcast %cst : f32 to vector<32x128xf32>
    %c0 = arith.constant 0 : index
    %c0_0 = arith.constant 0 : index
    %1 = vector.load %arg6[%c0, %c0_0] : memref<32x128xf32, #tpu.memory_space<vmem>>, vector<32x128xf32>
    tpu.vector_store %arg6[%c0, %c0_0], %0 {strides = array<i32>} : memref<32x128xf32, #tpu.memory_space<vmem>>, vector<32x128xf32>,
    %c0_1 = arith.constant 0 : index
    %c0_2 = arith.constant 0 : index
    %2 = vector.load %arg3[%c0_1, %c0_2] : memref<2x128xf32, #tpu.memory_space<vmem>>, vector<1x128xf32>
    %c1 = arith.constant 1 : index
    %c0_3 = arith.constant 0 : index
    %3 = vector.load %arg3[%c1, %c0_3] : memref<2x128xf32, #tpu.memory_space<vmem>>, vector<1x128xf32>
    %cst_4 = arith.constant 0.000000e+00 : f32
    %4 = vector.broadcast %cst_4 : f32 to vector<1x128xf32>
    %c0_5 = arith.constant 0 : index
    %c0_6 = arith.constant 0 : index
    %c0_7 = arith.constant 0 : index
    %5 = vector.load %arg1[%c0_5, %c0_6, %c0_7] : memref<2x16x128xf32, #tpu.memory_space<vmem>>, vector<1x16x128xf32>
    %6 = vector.shape_cast %5 : vector<1x16x128xf32> to vector<16x128xf32>
    %7 = vector.broadcast %2 : vector<1x128xf32> to vector<16x128xf32>
    %8 = arith.mulf %6, %7 : vector<16x128xf32>
    %9 = vector.broadcast %3 : vector<1x128xf32> to vector<16x128xf32>
    %10 = arith.addf %8, %9 : vector<16x128xf32>
    %cst_8 = arith.constant 0.000000e+00 : f32
    %11 = vector.broadcast %cst_8 : f32 to vector<16x128xf32>
    %12 = arith.maximumf %10, %11 : vector<16x128xf32>
    %c0_9 = arith.constant 0 : index
    %c128 = arith.constant 128 : index
    %13 = vector.load %arg7[%c0_9, %c128] : memref<32x384xf32, #tpu.memory_space<vmem>>, vector<16x128xf32>
    tpu.vector_store %arg7[%c0_9, %c128], %12 {strides = array<i32>} : memref<32x384xf32, #tpu.memory_space<vmem>>, vector<16x128xf32>,
    %c0_10 = arith.constant 0 : index
    %c0_11 = arith.constant 0 : index
    %14 = vector.load %arg7[%c0_10, %c0_11] : memref<32x384xf32, #tpu.memory_space<vmem>>, vector<1x128xf32>
    tpu.vector_store %arg7[%c0_10, %c0_11], %4 {strides = array<i32>} : memref<32x384xf32, #tpu.memory_space<vmem>>, vector<1x128xf32>,
    %15 = vector.extract_strided_slice %12 {offsets = [0, 0], sizes = [15, 128], strides = [1, 1]} : vector<16x128xf32> to vector<15x128xf32>
    %c1_12 = arith.constant 1 : index
    %c0_13 = arith.constant 0 : index
    %16 = vector.load %arg7[%c1_12, %c0_13] : memref<32x384xf32, #tpu.memory_space<vmem>>, vector<15x128xf32>
    tpu.vector_store %arg7[%c1_12, %c0_13], %15 {strides = array<i32>} : memref<32x384xf32, #tpu.memory_space<vmem>>, vector<15x128xf32>,
    %17 = vector.extract_strided_slice %12 {offsets = [1, 0], sizes = [15, 128], strides = [1, 1]} : vector<16x128xf32> to vector<15x128xf32>
    %c0_14 = arith.constant 0 : index
    %c256 = arith.constant 256 : index
    %18 = vector.load %arg7[%c0_14, %c256] : memref<32x384xf32, #tpu.memory_space<vmem>>, vector<15x128xf32>
    tpu.vector_store %arg7[%c0_14, %c256], %17 {strides = array<i32>} : memref<32x384xf32, #tpu.memory_space<vmem>>, vector<15x128xf32>,
    %c15 = arith.constant 15 : index
    %c256_15 = arith.constant 256 : index
    %19 = vector.load %arg7[%c15, %c256_15] : memref<32x384xf32, #tpu.memory_space<vmem>>, vector<1x128xf32>
    tpu.vector_store %arg7[%c15, %c256_15], %4 {strides = array<i32>} : memref<32x384xf32, #tpu.memory_space<vmem>>, vector<1x128xf32>,
    %c1_16 = arith.constant 1 : index
    %c0_17 = arith.constant 0 : index
    %c0_18 = arith.constant 0 : index
    %20 = vector.load %arg1[%c1_16, %c0_17, %c0_18] : memref<2x16x128xf32, #tpu.memory_space<vmem>>, vector<1x16x128xf32>
    %21 = vector.shape_cast %20 : vector<1x16x128xf32> to vector<16x128xf32>
    %22 = vector.broadcast %2 : vector<1x128xf32> to vector<16x128xf32>
    %23 = arith.mulf %21, %22 : vector<16x128xf32>
    %24 = vector.broadcast %3 : vector<1x128xf32> to vector<16x128xf32>
    %25 = arith.addf %23, %24 : vector<16x128xf32>
    %cst_19 = arith.constant 0.000000e+00 : f32
    %26 = vector.broadcast %cst_19 : f32 to vector<16x128xf32>
    %27 = arith.maximumf %25, %26 : vector<16x128xf32>
    %c16 = arith.constant 16 : index
    %c128_20 = arith.constant 128 : index
    %28 = vector.load %arg7[%c16, %c128_20] : memref<32x384xf32, #tpu.memory_space<vmem>>, vector<16x128xf32>
    tpu.vector_store %arg7[%c16, %c128_20], %27 {strides = array<i32>} : memref<32x384xf32, #tpu.memory_space<vmem>>, vector<16x128xf32>,
    %c16_21 = arith.constant 16 : index
    %c0_22 = arith.constant 0 : index
    %29 = vector.load %arg7[%c16_21, %c0_22] : memref<32x384xf32, #tpu.memory_space<vmem>>, vector<1x128xf32>
    tpu.vector_store %arg7[%c16_21, %c0_22], %4 {strides = array<i32>} : memref<32x384xf32, #tpu.memory_space<vmem>>, vector<1x128xf32>,
    %30 = vector.extract_strided_slice %27 {offsets = [0, 0], sizes = [15, 128], strides = [1, 1]} : vector<16x128xf32> to vector<15x128xf32>
    %c17 = arith.constant 17 : index
    %c0_23 = arith.constant 0 : index
    %31 = vector.load %arg7[%c17, %c0_23] : memref<32x384xf32, #tpu.memory_space<vmem>>, vector<15x128xf32>
    tpu.vector_store %arg7[%c17, %c0_23], %30 {strides = array<i32>} : memref<32x384xf32, #tpu.memory_space<vmem>>, vector<15x128xf32>,
    %32 = vector.extract_strided_slice %27 {offsets = [1, 0], sizes = [15, 128], strides = [1, 1]} : vector<16x128xf32> to vector<15x128xf32>
    %c16_24 = arith.constant 16 : index
    %c256_25 = arith.constant 256 : index
    %33 = vector.load %arg7[%c16_24, %c256_25] : memref<32x384xf32, #tpu.memory_space<vmem>>, vector<15x128xf32>
    tpu.vector_store %arg7[%c16_24, %c256_25], %32 {strides = array<i32>} : memref<32x384xf32, #tpu.memory_space<vmem>>, vector<15x128xf32>,
    %c31 = arith.constant 31 : index
    %c256_26 = arith.constant 256 : index
    %34 = vector.load %arg7[%c31, %c256_26] : memref<32x384xf32, #tpu.memory_space<vmem>>, vector<1x128xf32>
    tpu.vector_store %arg7[%c31, %c256_26], %4 {strides = array<i32>} : memref<32x384xf32, #tpu.memory_space<vmem>>, vector<1x128xf32>,
    %c0_27 = arith.constant 0 : index
    %c0_28 = arith.constant 0 : index
    %35 = vector.load %arg6[%c0_27, %c0_28] : memref<32x128xf32, #tpu.memory_space<vmem>>, vector<32x128xf32>
    %c0_29 = arith.constant 0 : index
    %c0_30 = arith.constant 0 : index
    %36 = vector.load %arg7[%c0_29, %c0_30] : memref<32x384xf32, #tpu.memory_space<vmem>>, vector<32x384xf32>
    %c0_31 = arith.constant 0 : index
    %c0_32 = arith.constant 0 : index
    %37 = vector.load %arg2[%c0_31, %c0_32] : memref<384x128xf32, #tpu.memory_space<vmem>>, vector<384x128xf32>
    %cst_33 = arith.constant dense<0.000000e+00> : vector<32x128xf32>
    %38 = tpu.matmul %36, %37, %cst_33 {dimension_numbers = #tpu.dot_dimension_numbers<[1], [0], [0], [1], [0, 0, 1, 1], [], []>} : vector<32x384xf32>, vector<384x128xf32>, vector<32x128xf32> -> vector<32x128xf32>
    %39 = arith.addf %35, %38 : vector<32x128xf32>
    %c0_34 = arith.constant 0 : index
    %c0_35 = arith.constant 0 : index
    %40 = vector.load %arg6[%c0_34, %c0_35] : memref<32x128xf32, #tpu.memory_space<vmem>>, vector<32x128xf32>
    tpu.vector_store %arg6[%c0_34, %c0_35], %39 {strides = array<i32>} : memref<32x128xf32, #tpu.memory_space<vmem>>, vector<32x128xf32>,
    %c0_36 = arith.constant 0 : index
    %c0_37 = arith.constant 0 : index
    %41 = vector.load %arg4[%c0_36, %c0_37] : memref<1x128xf32, #tpu.memory_space<vmem>>, vector<1x128xf32>
    %c0_38 = arith.constant 0 : index
    %c0_39 = arith.constant 0 : index
    %42 = vector.load %arg6[%c0_38, %c0_39] : memref<32x128xf32, #tpu.memory_space<vmem>>, vector<16x128xf32>
    %43 = vector.broadcast %41 : vector<1x128xf32> to vector<16x128xf32>
    %44 = arith.addf %42, %43 : vector<16x128xf32>
    %c0_40 = arith.constant 0 : index
    %c0_41 = arith.constant 0 : index
    %c0_42 = arith.constant 0 : index
    %45 = vector.load %arg5[%c0_40, %c0_41, %c0_42] : memref<2x16x128xf32, #tpu.memory_space<vmem>>, vector<1x16x128xf32>
    %46 = vector.shape_cast %45 : vector<1x16x128xf32> to vector<16x128xf32>
    %47 = vector.shape_cast %44 : vector<16x128xf32> to vector<1x16x128xf32>
    tpu.vector_store %arg5[%c0_40, %c0_41, %c0_42], %47 {strides = array<i32>} : memref<2x16x128xf32, #tpu.memory_space<vmem>>, vector<1x16x128xf32>,
    %c16_43 = arith.constant 16 : index
    %c0_44 = arith.constant 0 : index
    %48 = vector.load %arg6[%c16_43, %c0_44] : memref<32x128xf32, #tpu.memory_space<vmem>>, vector<16x128xf32>
    %49 = vector.broadcast %41 : vector<1x128xf32> to vector<16x128xf32>
    %50 = arith.addf %48, %49 : vector<16x128xf32>
    %c1_45 = arith.constant 1 : index
    %c0_46 = arith.constant 0 : index
    %c0_47 = arith.constant 0 : index
    %51 = vector.load %arg5[%c1_45, %c0_46, %c0_47] : memref<2x16x128xf32, #tpu.memory_space<vmem>>, vector<1x16x128xf32>
    %52 = vector.shape_cast %51 : vector<1x16x128xf32> to vector<16x128xf32>
    %53 = vector.shape_cast %50 : vector<16x128xf32> to vector<1x16x128xf32>
    tpu.vector_store %arg5[%c1_45, %c0_46, %c0_47], %53 {strides = array<i32>} : memref<2x16x128xf32, #tpu.memory_space<vmem>>, vector<1x16x128xf32>,
    return
  }
  func.func @transform_0(%arg0: i32) -> (i32, i32, i32) {
    %c0_i32 = arith.constant 0 : i32
    %c0_i32_0 = arith.constant 0 : i32
    %c0_i32_1 = arith.constant 0 : i32
    return %arg0, %c0_i32, %c0_i32_0 : i32, i32, i32
  }
  func.func @transform_1(%arg0: i32) -> (i32, i32) {
    %c0_i32 = arith.constant 0 : i32
    %c0_i32_0 = arith.constant 0 : i32
    %c0_i32_1 = arith.constant 0 : i32
    return %c0_i32, %c0_i32_0 : i32, i32
  }
  func.func @transform_2(%arg0: i32) -> (i32, i32) {
    %c0_i32 = arith.constant 0 : i32
    %c0_i32_0 = arith.constant 0 : i32
    %c0_i32_1 = arith.constant 0 : i32
    return %c0_i32, %c0_i32_0 : i32, i32
  }
  func.func @transform_3(%arg0: i32) -> (i32, i32) {
    %c0_i32 = arith.constant 0 : i32
    %c0_i32_0 = arith.constant 0 : i32
    %c0_i32_1 = arith.constant 0 : i32
    return %c0_i32, %c0_i32_0 : i32, i32
  }
  func.func @transform_4(%arg0: i32) -> (i32, i32, i32) {
    %c0_i32 = arith.constant 0 : i32
    %c0_i32_0 = arith.constant 0 : i32
    %c0_i32_1 = arith.constant 0 : i32
    return %arg0, %c0_i32, %c0_i32_0 : i32, i32, i32
  }
}

module attributes {stable_mosaic.version = 11 : i64} {
  func.func @kernel(%arg0: i32, %arg1: memref<2x16x128xf32, #tpu.memory_space<vmem>>, %arg2: memref<2x16x128xf32, #tpu.memory_space<vmem>>, %arg3: memref<384x128xf32, #tpu.memory_space<vmem>>, %arg4: memref<384x128xf32, #tpu.memory_space<vmem>>, %arg5: memref<2x128xf32, #tpu.memory_space<vmem>>, %arg6: memref<2x128xf32, #tpu.memory_space<vmem>>, %arg7: memref<1x128xf32, #tpu.memory_space<vmem>>, %arg8: memref<2x16x128xf32, #tpu.memory_space<vmem>>, %arg9: memref<32x128xf32, #tpu.memory_space<vmem>>, %arg10: memref<32x384xf32, #tpu.memory_space<vmem>>, %arg11: memref<32x384xf32, #tpu.memory_space<vmem>>) attributes {dimension_semantics = [#tpu.dimension_semantics<parallel>], iteration_bounds = array<i64: 1>, scalar_prefetch = 0 : i64, scratch_operands = 3 : i64, tpu.core_type = #tpu.core_type<tc>, window_params = [{transform_indices = @transform_0, window_bounds = array<i64: 2, 16, 128>}, {transform_indices = @transform_1, window_bounds = array<i64: 2, 16, 128>}, {pipeline_mode = #tpu.pipeline_mode<synchronous>, transform_indices = @transform_2, window_bounds = array<i64: 384, 128>}, {pipeline_mode = #tpu.pipeline_mode<synchronous>, transform_indices = @transform_3, window_bounds = array<i64: 384, 128>}, {pipeline_mode = #tpu.pipeline_mode<synchronous>, transform_indices = @transform_4, window_bounds = array<i64: 2, 128>}, {pipeline_mode = #tpu.pipeline_mode<synchronous>, transform_indices = @transform_5, window_bounds = array<i64: 2, 128>}, {pipeline_mode = #tpu.pipeline_mode<synchronous>, transform_indices = @transform_6, window_bounds = array<i64: 1, 128>}, {transform_indices = @transform_7, window_bounds = array<i64: 2, 16, 128>}]} {
    %cst = arith.constant 0.000000e+00 : f32
    %0 = vector.broadcast %cst : f32 to vector<32x128xf32>
    %c0 = arith.constant 0 : index
    %c0_0 = arith.constant 0 : index
    %1 = vector.load %arg9[%c0, %c0_0] : memref<32x128xf32, #tpu.memory_space<vmem>>, vector<32x128xf32>
    tpu.vector_store %arg9[%c0, %c0_0], %0 {strides = array<i32>} : memref<32x128xf32, #tpu.memory_space<vmem>>, vector<32x128xf32>,
    %c0_1 = arith.constant 0 : index
    %c0_2 = arith.constant 0 : index
    %2 = vector.load %arg5[%c0_1, %c0_2] : memref<2x128xf32, #tpu.memory_space<vmem>>, vector<1x128xf32>
    %c1 = arith.constant 1 : index
    %c0_3 = arith.constant 0 : index
    %3 = vector.load %arg5[%c1, %c0_3] : memref<2x128xf32, #tpu.memory_space<vmem>>, vector<1x128xf32>
    %cst_4 = arith.constant 0.000000e+00 : f32
    %4 = vector.broadcast %cst_4 : f32 to vector<1x128xf32>
    %c0_5 = arith.constant 0 : index
    %c0_6 = arith.constant 0 : index
    %c0_7 = arith.constant 0 : index
    %5 = vector.load %arg1[%c0_5, %c0_6, %c0_7] : memref<2x16x128xf32, #tpu.memory_space<vmem>>, vector<1x16x128xf32>
    %6 = vector.shape_cast %5 : vector<1x16x128xf32> to vector<16x128xf32>
    %7 = vector.broadcast %2 : vector<1x128xf32> to vector<16x128xf32>
    %8 = arith.mulf %6, %7 : vector<16x128xf32>
    %9 = vector.broadcast %3 : vector<1x128xf32> to vector<16x128xf32>
    %10 = arith.addf %8, %9 : vector<16x128xf32>
    %cst_8 = arith.constant 0.000000e+00 : f32
    %11 = vector.broadcast %cst_8 : f32 to vector<16x128xf32>
    %12 = arith.maximumf %10, %11 : vector<16x128xf32>
    %c0_9 = arith.constant 0 : index
    %c128 = arith.constant 128 : index
    %13 = vector.load %arg10[%c0_9, %c128] : memref<32x384xf32, #tpu.memory_space<vmem>>, vector<16x128xf32>
    tpu.vector_store %arg10[%c0_9, %c128], %12 {strides = array<i32>} : memref<32x384xf32, #tpu.memory_space<vmem>>, vector<16x128xf32>,
    %c0_10 = arith.constant 0 : index
    %c0_11 = arith.constant 0 : index
    %14 = vector.load %arg10[%c0_10, %c0_11] : memref<32x384xf32, #tpu.memory_space<vmem>>, vector<1x128xf32>
    tpu.vector_store %arg10[%c0_10, %c0_11], %4 {strides = array<i32>} : memref<32x384xf32, #tpu.memory_space<vmem>>, vector<1x128xf32>,
    %15 = vector.extract_strided_slice %12 {offsets = [0, 0], sizes = [15, 128], strides = [1, 1]} : vector<16x128xf32> to vector<15x128xf32>
    %c1_12 = arith.constant 1 : index
    %c0_13 = arith.constant 0 : index
    %16 = vector.load %arg10[%c1_12, %c0_13] : memref<32x384xf32, #tpu.memory_space<vmem>>, vector<15x128xf32>
    tpu.vector_store %arg10[%c1_12, %c0_13], %15 {strides = array<i32>} : memref<32x384xf32, #tpu.memory_space<vmem>>, vector<15x128xf32>,
    %17 = vector.extract_strided_slice %12 {offsets = [1, 0], sizes = [15, 128], strides = [1, 1]} : vector<16x128xf32> to vector<15x128xf32>
    %c0_14 = arith.constant 0 : index
    %c256 = arith.constant 256 : index
    %18 = vector.load %arg10[%c0_14, %c256] : memref<32x384xf32, #tpu.memory_space<vmem>>, vector<15x128xf32>
    tpu.vector_store %arg10[%c0_14, %c256], %17 {strides = array<i32>} : memref<32x384xf32, #tpu.memory_space<vmem>>, vector<15x128xf32>,
    %c15 = arith.constant 15 : index
    %c256_15 = arith.constant 256 : index
    %19 = vector.load %arg10[%c15, %c256_15] : memref<32x384xf32, #tpu.memory_space<vmem>>, vector<1x128xf32>
    tpu.vector_store %arg10[%c15, %c256_15], %4 {strides = array<i32>} : memref<32x384xf32, #tpu.memory_space<vmem>>, vector<1x128xf32>,
    %c1_16 = arith.constant 1 : index
    %c0_17 = arith.constant 0 : index
    %c0_18 = arith.constant 0 : index
    %20 = vector.load %arg1[%c1_16, %c0_17, %c0_18] : memref<2x16x128xf32, #tpu.memory_space<vmem>>, vector<1x16x128xf32>
    %21 = vector.shape_cast %20 : vector<1x16x128xf32> to vector<16x128xf32>
    %22 = vector.broadcast %2 : vector<1x128xf32> to vector<16x128xf32>
    %23 = arith.mulf %21, %22 : vector<16x128xf32>
    %24 = vector.broadcast %3 : vector<1x128xf32> to vector<16x128xf32>
    %25 = arith.addf %23, %24 : vector<16x128xf32>
    %cst_19 = arith.constant 0.000000e+00 : f32
    %26 = vector.broadcast %cst_19 : f32 to vector<16x128xf32>
    %27 = arith.maximumf %25, %26 : vector<16x128xf32>
    %c16 = arith.constant 16 : index
    %c128_20 = arith.constant 128 : index
    %28 = vector.load %arg10[%c16, %c128_20] : memref<32x384xf32, #tpu.memory_space<vmem>>, vector<16x128xf32>
    tpu.vector_store %arg10[%c16, %c128_20], %27 {strides = array<i32>} : memref<32x384xf32, #tpu.memory_space<vmem>>, vector<16x128xf32>,
    %c16_21 = arith.constant 16 : index
    %c0_22 = arith.constant 0 : index
    %29 = vector.load %arg10[%c16_21, %c0_22] : memref<32x384xf32, #tpu.memory_space<vmem>>, vector<1x128xf32>
    tpu.vector_store %arg10[%c16_21, %c0_22], %4 {strides = array<i32>} : memref<32x384xf32, #tpu.memory_space<vmem>>, vector<1x128xf32>,
    %30 = vector.extract_strided_slice %27 {offsets = [0, 0], sizes = [15, 128], strides = [1, 1]} : vector<16x128xf32> to vector<15x128xf32>
    %c17 = arith.constant 17 : index
    %c0_23 = arith.constant 0 : index
    %31 = vector.load %arg10[%c17, %c0_23] : memref<32x384xf32, #tpu.memory_space<vmem>>, vector<15x128xf32>
    tpu.vector_store %arg10[%c17, %c0_23], %30 {strides = array<i32>} : memref<32x384xf32, #tpu.memory_space<vmem>>, vector<15x128xf32>,
    %32 = vector.extract_strided_slice %27 {offsets = [1, 0], sizes = [15, 128], strides = [1, 1]} : vector<16x128xf32> to vector<15x128xf32>
    %c16_24 = arith.constant 16 : index
    %c256_25 = arith.constant 256 : index
    %33 = vector.load %arg10[%c16_24, %c256_25] : memref<32x384xf32, #tpu.memory_space<vmem>>, vector<15x128xf32>
    tpu.vector_store %arg10[%c16_24, %c256_25], %32 {strides = array<i32>} : memref<32x384xf32, #tpu.memory_space<vmem>>, vector<15x128xf32>,
    %c31 = arith.constant 31 : index
    %c256_26 = arith.constant 256 : index
    %34 = vector.load %arg10[%c31, %c256_26] : memref<32x384xf32, #tpu.memory_space<vmem>>, vector<1x128xf32>
    tpu.vector_store %arg10[%c31, %c256_26], %4 {strides = array<i32>} : memref<32x384xf32, #tpu.memory_space<vmem>>, vector<1x128xf32>,
    %c0_27 = arith.constant 0 : index
    %c0_28 = arith.constant 0 : index
    %35 = vector.load %arg9[%c0_27, %c0_28] : memref<32x128xf32, #tpu.memory_space<vmem>>, vector<32x128xf32>
    %c0_29 = arith.constant 0 : index
    %c0_30 = arith.constant 0 : index
    %36 = vector.load %arg10[%c0_29, %c0_30] : memref<32x384xf32, #tpu.memory_space<vmem>>, vector<32x384xf32>
    %c0_31 = arith.constant 0 : index
    %c0_32 = arith.constant 0 : index
    %37 = vector.load %arg3[%c0_31, %c0_32] : memref<384x128xf32, #tpu.memory_space<vmem>>, vector<384x128xf32>
    %cst_33 = arith.constant dense<0.000000e+00> : vector<32x128xf32>
    %38 = tpu.matmul %36, %37, %cst_33 {dimension_numbers = #tpu.dot_dimension_numbers<[1], [0], [0], [1], [0, 0, 1, 1], [], []>} : vector<32x384xf32>, vector<384x128xf32>, vector<32x128xf32> -> vector<32x128xf32>
    %39 = arith.addf %35, %38 : vector<32x128xf32>
    %c0_34 = arith.constant 0 : index
    %c0_35 = arith.constant 0 : index
    %40 = vector.load %arg9[%c0_34, %c0_35] : memref<32x128xf32, #tpu.memory_space<vmem>>, vector<32x128xf32>
    tpu.vector_store %arg9[%c0_34, %c0_35], %39 {strides = array<i32>} : memref<32x128xf32, #tpu.memory_space<vmem>>, vector<32x128xf32>,
    %c0_36 = arith.constant 0 : index
    %c0_37 = arith.constant 0 : index
    %41 = vector.load %arg6[%c0_36, %c0_37] : memref<2x128xf32, #tpu.memory_space<vmem>>, vector<1x128xf32>
    %c1_38 = arith.constant 1 : index
    %c0_39 = arith.constant 0 : index
    %42 = vector.load %arg6[%c1_38, %c0_39] : memref<2x128xf32, #tpu.memory_space<vmem>>, vector<1x128xf32>
    %cst_40 = arith.constant 0.000000e+00 : f32
    %43 = vector.broadcast %cst_40 : f32 to vector<1x128xf32>
    %c0_41 = arith.constant 0 : index
    %c0_42 = arith.constant 0 : index
    %c0_43 = arith.constant 0 : index
    %44 = vector.load %arg2[%c0_41, %c0_42, %c0_43] : memref<2x16x128xf32, #tpu.memory_space<vmem>>, vector<1x16x128xf32>
    %45 = vector.shape_cast %44 : vector<1x16x128xf32> to vector<16x128xf32>
    %46 = vector.broadcast %41 : vector<1x128xf32> to vector<16x128xf32>
    %47 = arith.mulf %45, %46 : vector<16x128xf32>
    %48 = vector.broadcast %42 : vector<1x128xf32> to vector<16x128xf32>
    %49 = arith.addf %47, %48 : vector<16x128xf32>
    %cst_44 = arith.constant 0.000000e+00 : f32
    %50 = vector.broadcast %cst_44 : f32 to vector<16x128xf32>
    %51 = arith.maximumf %49, %50 : vector<16x128xf32>
    %c0_45 = arith.constant 0 : index
    %c128_46 = arith.constant 128 : index
    %52 = vector.load %arg11[%c0_45, %c128_46] : memref<32x384xf32, #tpu.memory_space<vmem>>, vector<16x128xf32>
    tpu.vector_store %arg11[%c0_45, %c128_46], %51 {strides = array<i32>} : memref<32x384xf32, #tpu.memory_space<vmem>>, vector<16x128xf32>,
    %c0_47 = arith.constant 0 : index
    %c0_48 = arith.constant 0 : index
    %53 = vector.load %arg11[%c0_47, %c0_48] : memref<32x384xf32, #tpu.memory_space<vmem>>, vector<1x128xf32>
    tpu.vector_store %arg11[%c0_47, %c0_48], %43 {strides = array<i32>} : memref<32x384xf32, #tpu.memory_space<vmem>>, vector<1x128xf32>,
    %54 = vector.extract_strided_slice %51 {offsets = [0, 0], sizes = [15, 128], strides = [1, 1]} : vector<16x128xf32> to vector<15x128xf32>
    %c1_49 = arith.constant 1 : index
    %c0_50 = arith.constant 0 : index
    %55 = vector.load %arg11[%c1_49, %c0_50] : memref<32x384xf32, #tpu.memory_space<vmem>>, vector<15x128xf32>
    tpu.vector_store %arg11[%c1_49, %c0_50], %54 {strides = array<i32>} : memref<32x384xf32, #tpu.memory_space<vmem>>, vector<15x128xf32>,
    %56 = vector.extract_strided_slice %51 {offsets = [1, 0], sizes = [15, 128], strides = [1, 1]} : vector<16x128xf32> to vector<15x128xf32>
    %c0_51 = arith.constant 0 : index
    %c256_52 = arith.constant 256 : index
    %57 = vector.load %arg11[%c0_51, %c256_52] : memref<32x384xf32, #tpu.memory_space<vmem>>, vector<15x128xf32>
    tpu.vector_store %arg11[%c0_51, %c256_52], %56 {strides = array<i32>} : memref<32x384xf32, #tpu.memory_space<vmem>>, vector<15x128xf32>,
    %c15_53 = arith.constant 15 : index
    %c256_54 = arith.constant 256 : index
    %58 = vector.load %arg11[%c15_53, %c256_54] : memref<32x384xf32, #tpu.memory_space<vmem>>, vector<1x128xf32>
    tpu.vector_store %arg11[%c15_53, %c256_54], %43 {strides = array<i32>} : memref<32x384xf32, #tpu.memory_space<vmem>>, vector<1x128xf32>,
    %c1_55 = arith.constant 1 : index
    %c0_56 = arith.constant 0 : index
    %c0_57 = arith.constant 0 : index
    %59 = vector.load %arg2[%c1_55, %c0_56, %c0_57] : memref<2x16x128xf32, #tpu.memory_space<vmem>>, vector<1x16x128xf32>
    %60 = vector.shape_cast %59 : vector<1x16x128xf32> to vector<16x128xf32>
    %61 = vector.broadcast %41 : vector<1x128xf32> to vector<16x128xf32>
    %62 = arith.mulf %60, %61 : vector<16x128xf32>
    %63 = vector.broadcast %42 : vector<1x128xf32> to vector<16x128xf32>
    %64 = arith.addf %62, %63 : vector<16x128xf32>
    %cst_58 = arith.constant 0.000000e+00 : f32
    %65 = vector.broadcast %cst_58 : f32 to vector<16x128xf32>
    %66 = arith.maximumf %64, %65 : vector<16x128xf32>
    %c16_59 = arith.constant 16 : index
    %c128_60 = arith.constant 128 : index
    %67 = vector.load %arg11[%c16_59, %c128_60] : memref<32x384xf32, #tpu.memory_space<vmem>>, vector<16x128xf32>
    tpu.vector_store %arg11[%c16_59, %c128_60], %66 {strides = array<i32>} : memref<32x384xf32, #tpu.memory_space<vmem>>, vector<16x128xf32>,
    %c16_61 = arith.constant 16 : index
    %c0_62 = arith.constant 0 : index
    %68 = vector.load %arg11[%c16_61, %c0_62] : memref<32x384xf32, #tpu.memory_space<vmem>>, vector<1x128xf32>
    tpu.vector_store %arg11[%c16_61, %c0_62], %43 {strides = array<i32>} : memref<32x384xf32, #tpu.memory_space<vmem>>, vector<1x128xf32>,
    %69 = vector.extract_strided_slice %66 {offsets = [0, 0], sizes = [15, 128], strides = [1, 1]} : vector<16x128xf32> to vector<15x128xf32>
    %c17_63 = arith.constant 17 : index
    %c0_64 = arith.constant 0 : index
    %70 = vector.load %arg11[%c17_63, %c0_64] : memref<32x384xf32, #tpu.memory_space<vmem>>, vector<15x128xf32>
    tpu.vector_store %arg11[%c17_63, %c0_64], %69 {strides = array<i32>} : memref<32x384xf32, #tpu.memory_space<vmem>>, vector<15x128xf32>,
    %71 = vector.extract_strided_slice %66 {offsets = [1, 0], sizes = [15, 128], strides = [1, 1]} : vector<16x128xf32> to vector<15x128xf32>
    %c16_65 = arith.constant 16 : index
    %c256_66 = arith.constant 256 : index
    %72 = vector.load %arg11[%c16_65, %c256_66] : memref<32x384xf32, #tpu.memory_space<vmem>>, vector<15x128xf32>
    tpu.vector_store %arg11[%c16_65, %c256_66], %71 {strides = array<i32>} : memref<32x384xf32, #tpu.memory_space<vmem>>, vector<15x128xf32>,
    %c31_67 = arith.constant 31 : index
    %c256_68 = arith.constant 256 : index
    %73 = vector.load %arg11[%c31_67, %c256_68] : memref<32x384xf32, #tpu.memory_space<vmem>>, vector<1x128xf32>
    tpu.vector_store %arg11[%c31_67, %c256_68], %43 {strides = array<i32>} : memref<32x384xf32, #tpu.memory_space<vmem>>, vector<1x128xf32>,
    %c0_69 = arith.constant 0 : index
    %c0_70 = arith.constant 0 : index
    %74 = vector.load %arg9[%c0_69, %c0_70] : memref<32x128xf32, #tpu.memory_space<vmem>>, vector<32x128xf32>
    %c0_71 = arith.constant 0 : index
    %c0_72 = arith.constant 0 : index
    %75 = vector.load %arg11[%c0_71, %c0_72] : memref<32x384xf32, #tpu.memory_space<vmem>>, vector<32x384xf32>
    %c0_73 = arith.constant 0 : index
    %c0_74 = arith.constant 0 : index
    %76 = vector.load %arg4[%c0_73, %c0_74] : memref<384x128xf32, #tpu.memory_space<vmem>>, vector<384x128xf32>
    %cst_75 = arith.constant dense<0.000000e+00> : vector<32x128xf32>
    %77 = tpu.matmul %75, %76, %cst_75 {dimension_numbers = #tpu.dot_dimension_numbers<[1], [0], [0], [1], [0, 0, 1, 1], [], []>} : vector<32x384xf32>, vector<384x128xf32>, vector<32x128xf32> -> vector<32x128xf32>
    %78 = arith.addf %74, %77 : vector<32x128xf32>
    %c0_76 = arith.constant 0 : index
    %c0_77 = arith.constant 0 : index
    %79 = vector.load %arg9[%c0_76, %c0_77] : memref<32x128xf32, #tpu.memory_space<vmem>>, vector<32x128xf32>
    tpu.vector_store %arg9[%c0_76, %c0_77], %78 {strides = array<i32>} : memref<32x128xf32, #tpu.memory_space<vmem>>, vector<32x128xf32>,
    %c0_78 = arith.constant 0 : index
    %c0_79 = arith.constant 0 : index
    %80 = vector.load %arg7[%c0_78, %c0_79] : memref<1x128xf32, #tpu.memory_space<vmem>>, vector<1x128xf32>
    %c0_80 = arith.constant 0 : index
    %c0_81 = arith.constant 0 : index
    %81 = vector.load %arg9[%c0_80, %c0_81] : memref<32x128xf32, #tpu.memory_space<vmem>>, vector<16x128xf32>
    %82 = vector.broadcast %80 : vector<1x128xf32> to vector<16x128xf32>
    %83 = arith.addf %81, %82 : vector<16x128xf32>
    %c0_82 = arith.constant 0 : index
    %c0_83 = arith.constant 0 : index
    %c0_84 = arith.constant 0 : index
    %84 = vector.load %arg8[%c0_82, %c0_83, %c0_84] : memref<2x16x128xf32, #tpu.memory_space<vmem>>, vector<1x16x128xf32>
    %85 = vector.shape_cast %84 : vector<1x16x128xf32> to vector<16x128xf32>
    %86 = vector.shape_cast %83 : vector<16x128xf32> to vector<1x16x128xf32>
    tpu.vector_store %arg8[%c0_82, %c0_83, %c0_84], %86 {strides = array<i32>} : memref<2x16x128xf32, #tpu.memory_space<vmem>>, vector<1x16x128xf32>,
    %c16_85 = arith.constant 16 : index
    %c0_86 = arith.constant 0 : index
    %87 = vector.load %arg9[%c16_85, %c0_86] : memref<32x128xf32, #tpu.memory_space<vmem>>, vector<16x128xf32>
    %88 = vector.broadcast %80 : vector<1x128xf32> to vector<16x128xf32>
    %89 = arith.addf %87, %88 : vector<16x128xf32>
    %c1_87 = arith.constant 1 : index
    %c0_88 = arith.constant 0 : index
    %c0_89 = arith.constant 0 : index
    %90 = vector.load %arg8[%c1_87, %c0_88, %c0_89] : memref<2x16x128xf32, #tpu.memory_space<vmem>>, vector<1x16x128xf32>
    %91 = vector.shape_cast %90 : vector<1x16x128xf32> to vector<16x128xf32>
    %92 = vector.shape_cast %89 : vector<16x128xf32> to vector<1x16x128xf32>
    tpu.vector_store %arg8[%c1_87, %c0_88, %c0_89], %92 {strides = array<i32>} : memref<2x16x128xf32, #tpu.memory_space<vmem>>, vector<1x16x128xf32>,
    return
  }
  func.func @transform_0(%arg0: i32) -> (i32, i32, i32) {
    %c0_i32 = arith.constant 0 : i32
    %c0_i32_0 = arith.constant 0 : i32
    %c0_i32_1 = arith.constant 0 : i32
    return %arg0, %c0_i32, %c0_i32_0 : i32, i32, i32
  }
  func.func @transform_1(%arg0: i32) -> (i32, i32, i32) {
    %c0_i32 = arith.constant 0 : i32
    %c0_i32_0 = arith.constant 0 : i32
    %c0_i32_1 = arith.constant 0 : i32
    return %arg0, %c0_i32, %c0_i32_0 : i32, i32, i32
  }
  func.func @transform_2(%arg0: i32) -> (i32, i32) {
    %c0_i32 = arith.constant 0 : i32
    %c0_i32_0 = arith.constant 0 : i32
    %c0_i32_1 = arith.constant 0 : i32
    return %c0_i32, %c0_i32_0 : i32, i32
  }
  func.func @transform_3(%arg0: i32) -> (i32, i32) {
    %c0_i32 = arith.constant 0 : i32
    %c0_i32_0 = arith.constant 0 : i32
    %c0_i32_1 = arith.constant 0 : i32
    return %c0_i32, %c0_i32_0 : i32, i32
  }
  func.func @transform_4(%arg0: i32) -> (i32, i32) {
    %c0_i32 = arith.constant 0 : i32
    %c0_i32_0 = arith.constant 0 : i32
    %c0_i32_1 = arith.constant 0 : i32
    return %c0_i32, %c0_i32_0 : i32, i32
  }
  func.func @transform_5(%arg0: i32) -> (i32, i32) {
    %c0_i32 = arith.constant 0 : i32
    %c0_i32_0 = arith.constant 0 : i32
    %c0_i32_1 = arith.constant 0 : i32
    return %c0_i32, %c0_i32_0 : i32, i32
  }
  func.func @transform_6(%arg0: i32) -> (i32, i32) {
    %c0_i32 = arith.constant 0 : i32
    %c0_i32_0 = arith.constant 0 : i32
    %c0_i32_1 = arith.constant 0 : i32
    return %c0_i32, %c0_i32_0 : i32, i32
  }
  func.func @transform_7(%arg0: i32) -> (i32, i32, i32) {
    %c0_i32 = arith.constant 0 : i32
    %c0_i32_0 = arith.constant 0 : i32
    %c0_i32_1 = arith.constant 0 : i32
    return %arg0, %c0_i32, %c0_i32_0 : i32, i32, i32
  }
}

</mosaic_0001>

<bundles_post_ra>
// kernel: tile.47
= control target key start
LH: loop header
LB: loop body
LE: loop exit
PB: predicated region body
PF: predicated region fallthrough
CT: control target
= control target key end

     0   :  { %s28_s0 = inlined_call_operand.vmem [shape: f32[8], index: 0, kind: input, shape index: {}]   ;;  %s29_s1 = inlined_call_operand.vmem [shape: f32[16,8], index: 1, kind: output, shape index: {}]  }
   0x1   :  { %v4_v0 = vld [vmem:[%s28_s0] ss:$0 sm:$0xff] }
   0x2   :  { %5 = vst [vmem:[%s29_s1] sm:$0xff] %v4_v0  ;;  %8 = vst [vmem:[%s29_s1 + $0x8] sm:$0xff] %v4_v0 }

// kernel: tile.49
= control target key start
LH: loop header
LB: loop body
LE: loop exit
PB: predicated region body
PF: predicated region fallthrough
CT: control target
= control target key end

     0   :  { %s133_s10 = smov 120   ;;  %s134_s11 = smov 104   ;;  %vm3_vm0 = vcmask 64512   ;;  %vm9_vm1 = vcmask 1048512   ;;  %vm15_vm2 = vcmask 982912   ;;  %vm21_vm3 = vcmask 917312   ;;  %s209_s0 = inlined_call_operand.vmem [shape: f32[16,8], index: 0, kind: input, shape index: {}]   ;;  %s210_s1 = inlined_call_operand.vmem [shape: f32[1,128], index: 1, kind: output, shape index: {}]  }
   0x1   :  { %v103_v0 = vld [vmem:[%s209_s0 + $0xf] sm:$0x1]   ;;  %v105_v1 = vld [vmem:[%s209_s0 + $0xd] sm:$0x1]   ;;  %v104_v2 = vld [vmem:[%s209_s0 + $0xe] sm:$0x1]  }
   0x2   :  { %7 = vrot.lane.b32.xlu0 %v103_v0, %s133_s10  ;;  %19 = vrot.lane.b32.xlu1 %v105_v1, %s134_s11  ;;  %v106_v3 = vld [vmem:[%s209_s0 + $0xc] sm:$0x1]   ;;  %s135_s16 = smov 112   ;;  %s136_s17 = smov 96   ;;  %v107_v4 = vld [vmem:[%s209_s0 + $0xb] sm:$0x1]  }
   0x3   :  { %v108_v5 = vld [vmem:[%s209_s0 + $0xa] sm:$0x1]   ;;  %v2_v6 = vld [vmem:[%s209_s0] sm:$0x1]   ;;  %s137_s24 = smov 88   ;;  %s138_s25 = smov 80  }
   0x4   :  { %4 = vst.msk [vmem:[#allocation0] sm:$0x1] %vm3_vm0, %v2_v6   ;;  %v109_v7 = vld [vmem:[%s209_s0 + $0x9] sm:$0x1]   ;;  %v110_v8 = vld [vmem:[%s209_s0 + $0x8] sm:$0x1]  }
   0x5   :  { %s139_s30 = smov 72   ;;  %s140_s2 = smov 64   ;;  %v111_v9 = vld [vmem:[%s209_s0 + $0x7] sm:$0x1]   ;;  %v112_v10 = vld [vmem:[%s209_s0 + $0x6] sm:$0x1]  }
   0x6   :  { %13 = vrot.lane.b32.xlu0 %v104_v2, %s135_s16  ;;  %25 = vrot.lane.b32.xlu1 %v106_v3, %s136_s17  ;;  %s141_s7 = smov 56   ;;  %s142_s8 = smov 48   ;;  %v113_v11 = vld [vmem:[%s209_s0 + $0x5] sm:$0x1]   ;;  %v114_v12 = vld [vmem:[%s209_s0 + $0x4] sm:$0x1]  }
   0x7   :  { %s143_s13 = smov 40   ;;  %s144_s14 = smov 32   ;;  %v115_v13 = vld [vmem:[%s209_s0 + $0x3] sm:$0x1]   ;;  %v116_v14 = vld [vmem:[%s209_s0 + $0x2] sm:$0x1]  }
   0x8   :  { %s145_s19 = smov 24   ;;  %s146_s20 = smov 16   ;;  %v117_v15 = vld [vmem:[%s209_s0 + $0x1] sm:$0x1]   ;;  %vm27_vm4 = vcmask 851712   ;;  %vm33_vm5 = vcmask 786112  }
   0x9   :  { %s147_s0 = smov 8   ;;  %vm39_vm6 = vcmask 720512   ;;  %vm45_vm7 = vcmask 654912   ;;  %vm51_vm8 = vcmask 589312   ;;  %vm57_vm9 = vcmask 523712  }
   0xa   :  { %31 = vrot.lane.b32.xlu0 %v107_v4, %s137_s24  ;;  %37 = vrot.lane.b32.xlu1 %v108_v5, %s138_s25  ;;  %vm63_vm10 = vcmask 458112   ;;  %vm69_vm11 = vcmask 392512   ;;  %vm75_vm12 = vcmask 326912   ;;  %vm81_vm13 = vcmask 261312  }
   0xb   :  { %vm87_vm14 = vcmask 195712   ;;  %vm93_vm15 = vcmask 130112  }
   0xe   :  { %43 = vrot.lane.b32.xlu0 %v109_v7, %s139_s30  ;;  %49 = vrot.lane.b32.xlu1 %v110_v8, %s140_s2 }
  0x12   :  { %55 = vrot.lane.b32.xlu0 %v111_v9, %s141_s7  ;;  %61 = vrot.lane.b32.xlu1 %v112_v10, %s142_s8 }
  0x16   :  { %67 = vrot.lane.b32.xlu0 %v113_v11, %s143_s13  ;;  %73 = vrot.lane.b32.xlu1 %v114_v12, %s144_s14 }
  0x1a   :  { %79 = vrot.lane.b32.xlu0 %v115_v13, %s145_s19  ;;  %85 = vrot.lane.b32.xlu1 %v116_v14, %s146_s20 }
  0x1e   :  { %91 = vrot.lane.b32.xlu0 %v117_v15, %s147_s0 }
  0x74   :  { %v8_v16 = vpop.permute.xlu0 %7   ;;  %v20_v17 = vpop.permute.xlu1 %19  }
  0x75   :  { %10 = vst.msk [vmem:[#allocation0] sm:$0x1] %vm9_vm1, %v8_v16  }
  0x78   :  { %v14_v18 = vpop.permute.xlu0 %13   ;;  %v26_v19 = vpop.permute.xlu1 %25  }
  0x79   :  { %16 = vst.msk [vmem:[#allocation0] sm:$0x1] %vm15_vm2, %v14_v18  }
  0x7a   :  { %22 = vst.msk [vmem:[#allocation0] sm:$0x1] %vm21_vm3, %v20_v17  }
  0x7b   :  { %28 = vst.msk [vmem:[#allocation0] sm:$0x1] %vm27_vm4, %v26_v19  }
  0x7c   :  { %v32_v20 = vpop.permute.xlu0 %31   ;;  %v38_v21 = vpop.permute.xlu1 %37  }
  0x7d   :  { %34 = vst.msk [vmem:[#allocation0] sm:$0x1] %vm33_vm5, %v32_v20  }
  0x7e   :  { %40 = vst.msk [vmem:[#allocation0] sm:$0x1] %vm39_vm6, %v38_v21  }
  0x80   :  { %v44_v22 = vpop.permute.xlu0 %43   ;;  %v50_v23 = vpop.permute.xlu1 %49  }
  0x81   :  { %46 = vst.msk [vmem:[#allocation0] sm:$0x1] %vm45_vm7, %v44_v22  }
  0x82   :  { %52 = vst.msk [vmem:[#allocation0] sm:$0x1] %vm51_vm8, %v50_v23  }
  0x84   :  { %v56_v24 = vpop.permute.xlu0 %55   ;;  %v62_v25 = vpop.permute.xlu1 %61  }
  0x85   :  { %58 = vst.msk [vmem:[#allocation0] sm:$0x1] %vm57_vm9, %v56_v24  }
  0x86   :  { %64 = vst.msk [vmem:[#allocation0] sm:$0x1] %vm63_vm10, %v62_v25  }
  0x88   :  { %v68_v26 = vpop.permute.xlu0 %67   ;;  %v74_v27 = vpop.permute.xlu1 %73  }
  0x89   :  { %70 = vst.msk [vmem:[#allocation0] sm:$0x1] %vm69_vm11, %v68_v26  }
  0x8a   :  { %76 = vst.msk [vmem:[#allocation0] sm:$0x1] %vm75_vm12, %v74_v27  }
  0x8c   :  { %v80_v28 = vpop.permute.xlu0 %79   ;;  %v86_v29 = vpop.permute.xlu1 %85  }
  0x8d   :  { %82 = vst.msk [vmem:[#allocation0] sm:$0x1] %vm81_vm13, %v80_v28  }
  0x8e   :  { %88 = vst.msk [vmem:[#allocation0] sm:$0x1] %vm87_vm14, %v86_v29  }
  0x90   :  { %v92_v30 = vpop.permute.xlu0 %91  }
  0x91   :  { %94 = vst.msk [vmem:[#allocation0] sm:$0x1] %vm93_vm15, %v92_v30  }
  0x98   :  { %v99_v31 = vld [vmem:[#allocation0] sm:$0x1] }
  0x99   :  { %102 = vst [vmem:[%s210_s1] sm:$0x1] %v99_v31 }

// kernel: _lambda_.2
= control target key start
LH: loop header
LB: loop body
LE: loop exit
PB: predicated region body
PF: predicated region fallthrough
CT: control target
= control target key end

     0   :  { %v466_v3 = vmov 0.0   ;;  %vm52_vm0 = vcmask 1046528   ;;  %vm44_vm1 = vcmask 1040384   ;;  %s678_s1 = inlined_call_operand.vmem [shape: f32[384,128], index: 1, kind: input, shape index: {}]   ;;  %s679_s2 = inlined_call_operand.vmem [shape: f32[2,128], index: 2, kind: input, shape index: {}]   ;;  %s680_s0 = inlined_call_operand.vmem [shape: f32[2,16,128], index: 0, kind: input, shape index: {}]   ;;  %s681_s3 = inlined_call_operand.vmem [shape: f32[1,128], index: 3, kind: input, shape index: {}]   ;;  %s682_s4 = inlined_call_operand.vmem [shape: f32[2,16,128], index: 4, kind: output, shape index: {}]  }
   0x1   :  { %v137_v0 = vld [vmem:[%s678_s1 + $0xf8] sm:$0xff]  ;;  %v136_v2 = vld [vmem:[%s678_s1 + $0xf0] sm:$0xff]  ;;  %41 = vst [vmem:[#allocation3] sm:$0x1] %v466_v3  ;;  %60 = vst [vmem:[#allocation3 + $0x2f] sm:$0x1] %v466_v3 }
   0x2   :  { %v121_v1 = vld [vmem:[%s678_s1 + $0x78] sm:$0xff]  ;;  %72 = vst [vmem:[#allocation3 + $0x30] sm:$0x1] %v466_v3  ;;  %89 = vst [vmem:[#allocation3 + $0x5f] sm:$0x1] %v466_v3  ;;  %363 = vmatprep.subr.mxu0 %v137_v0  ;;  %v120_v5 = vld [vmem:[%s678_s1 + $0x70] sm:$0xff] }
   0x3   :  { %v153_v4 = vld [vmem:[%s678_s1 + $0x178] sm:$0xff]  ;;  %364 = vmatpush3.msra.mxu0 %v121_v1  ;;  %v135_v6 = vld [vmem:[%s678_s1 + $0xe8] sm:$0xff]  ;;  %v152_v7 = vld [vmem:[%s678_s1 + $0x170] sm:$0xff] }
   0x4   :  { %427 = vmatprep.subr.mxu1 %v153_v4  ;;  %365 = vmatprep.subr.mxu0 %v136_v2  ;;  %v119_v8 = vld [vmem:[%s678_s1 + $0x68] sm:$0xff]  ;;  %v134_v10 = vld [vmem:[%s678_s1 + $0xe0] sm:$0xff]  ;;  %v133_v13 = vld [vmem:[%s678_s1 + $0xd8] sm:$0xff] }
   0x5   :  { %428 = vmatpush3.msra.mxu1 %v153_v4  ;;  %v151_v9 = vld [vmem:[%s678_s1 + $0x168] sm:$0xff]  ;;  %366 = vmatpush3.msra.mxu0 %v120_v5  ;;  %v118_v11 = vld [vmem:[%s678_s1 + $0x60] sm:$0xff]  ;;  %v117_v14 = vld [vmem:[%s678_s1 + $0x58] sm:$0xff] }
   0x6   :  { %429 = vmatprep.subr.mxu1 %v152_v7  ;;  %367 = vmatprep.subr.mxu0 %v135_v6  ;;  %v150_v12 = vld [vmem:[%s678_s1 + $0x160] sm:$0xff]  ;;  %v149_v15 = vld [vmem:[%s678_s1 + $0x158] sm:$0xff]  ;;  %v132_v16 = vld [vmem:[%s678_s1 + $0xd0] sm:$0xff] }
   0x7   :  { %430 = vmatpush3.msra.mxu1 %v152_v7  ;;  %368 = vmatpush3.msra.mxu0 %v119_v8  ;;  %v116_v17 = vld [vmem:[%s678_s1 + $0x50] sm:$0xff]  ;;  %v131_v19 = vld [vmem:[%s678_s1 + $0xc8] sm:$0xff]  ;;  %v130_v22 = vld [vmem:[%s678_s1 + $0xc0] sm:$0xff] }
   0x8   :  { %431 = vmatprep.subr.mxu1 %v151_v9  ;;  %369 = vmatprep.subr.mxu0 %v134_v10  ;;  %v148_v18 = vld [vmem:[%s678_s1 + $0x150] sm:$0xff]  ;;  %v115_v20 = vld [vmem:[%s678_s1 + $0x48] sm:$0xff]  ;;  %v114_v23 = vld [vmem:[%s678_s1 + $0x40] sm:$0xff] }
   0x9   :  { %432 = vmatpush3.msra.mxu1 %v151_v9  ;;  %370 = vmatpush3.msra.mxu0 %v118_v11  ;;  %v147_v21 = vld [vmem:[%s678_s1 + $0x148] sm:$0xff]  ;;  %v146_v24 = vld [vmem:[%s678_s1 + $0x140] sm:$0xff]  ;;  %v129_v25 = vld [vmem:[%s678_s1 + $0xb8] sm:$0xff] }
   0xa   :  { %433 = vmatprep.subr.mxu1 %v150_v12  ;;  %371 = vmatprep.subr.mxu0 %v133_v13  ;;  %v113_v26 = vld [vmem:[%s678_s1 + $0x38] sm:$0xff]  ;;  %v128_v27 = vld [vmem:[%s678_s1 + $0xb0] sm:$0xff]  ;;  %v356_v30 = vld [vmem:[%s679_s2] ss:$0 sm:$0xff] }
   0xb   :  { %434 = vmatpush3.msra.mxu1 %v150_v12  ;;  %372 = vmatpush3.msra.mxu0 %v117_v14  ;;  %v145_v28 = vld [vmem:[%s678_s1 + $0x138] sm:$0xff]  ;;  %v112_v29 = vld [vmem:[%s678_s1 + $0x30] sm:$0xff]  ;;  %v357_v32 = vld [vmem:[%s679_s2 + $0x1] ss:$0 sm:$0xff] }
   0xc   :  { %435 = vmatprep.subr.mxu1 %v149_v15  ;;  %373 = vmatprep.subr.mxu0 %v132_v16  ;;  %v144_v31 = vld [vmem:[%s678_s1 + $0x130] sm:$0xff]  ;;  %v23_v33 = vld [vmem:[%s680_s0] sm:$0xff]  ;;  %v24_v35 = vld [vmem:[%s680_s0 + $0x8] sm:$0xff] }
   0xd   :  { %436 = vmatpush3.msra.mxu1 %v149_v15  ;;  %374 = vmatpush3.msra.mxu0 %v116_v17  ;;  %v29_v34 = vmul.f32 %v356_v30, %v23_v33  ;;  %v358_v36 = vld [vmem:[%s680_s0 + $0x10] sm:$0xff]  ;;  %v359_v37 = vld [vmem:[%s680_s0 + $0x18] sm:$0xff]  ;;  %v127_v38 = vld [vmem:[%s678_s1 + $0xa8] sm:$0xff]  ;;  %v30_v39 = vmul.f32 %v356_v30, %v24_v35 }
   0xe   :  { %437 = vmatprep.subr.mxu1 %v148_v18  ;;  %375 = vmatprep.subr.mxu0 %v131_v19  ;;  %v64_v40 = vmul.f32 %v358_v36, %v356_v30  ;;  %v65_v41 = vmul.f32 %v359_v37, %v356_v30  ;;  %v111_v42 = vld [vmem:[%s678_s1 + $0x28] sm:$0xff]  ;;  %v126_v45 = vld [vmem:[%s678_s1 + $0xa0] sm:$0xff]  ;;  %v125_v52 = vld [vmem:[%s678_s1 + $0x98] sm:$0xff] }
   0xf   :  { %438 = vmatpush3.msra.mxu1 %v148_v18  ;;  %376 = vmatpush3.msra.mxu0 %v115_v20  ;;  %v143_v43 = vld [vmem:[%s678_s1 + $0x128] sm:$0xff]  ;;  %v35_v44 = vadd.f32 %v357_v32, %v29_v34  ;;  %v36_v46 = vadd.f32 %v357_v32, %v30_v39  ;;  %v110_v49 = vld [vmem:[%s678_s1 + $0x20] sm:$0xff]  ;;  %v109_v56 = vld [vmem:[%s678_s1 + $0x18] sm:$0xff] }
  0x10   :  { %439 = vmatprep.subr.mxu1 %v147_v21  ;;  %377 = vmatprep.subr.mxu0 %v130_v22  ;;  %v66_v47 = vadd.f32 %v357_v32, %v64_v40  ;;  %v67_v48 = vadd.f32 %v357_v32, %v65_v41  ;;  %v142_v50 = vld [vmem:[%s678_s1 + $0x120] sm:$0xff]  ;;  %v141_v57 = vld [vmem:[%s678_s1 + $0x118] sm:$0xff]  ;;  %v124_v60 = vld [vmem:[%s678_s1 + $0x90] sm:$0xff] }
  0x11   :  { %440 = vmatpush3.msra.mxu1 %v147_v21  ;;  %378 = vmatpush3.msra.mxu0 %v114_v23  ;;  %v37_v51 = vmax.f32 %v35_v44, 0.0  ;;  %v38_v53 = vmax.f32 %v36_v46, 0.0  ;;  %v108_v1 = vld [vmem:[%s678_s1 + $0x10] sm:$0xff]  ;;  %v123_v5 = vld [vmem:[%s678_s1 + $0x88] sm:$0xff]  ;;  %v122_v12 = vld [vmem:[%s678_s1 + $0x80] sm:$0xff] }
  0x12   :  { %441 = vmatprep.subr.mxu1 %v146_v24  ;;  %379 = vmatprep.subr.mxu0 %v129_v25  ;;  %v68_v54 = vmax.f32 %v66_v47, 0.0  ;;  %v621_v55 = vmax.f32 %v67_v48, 0.0  ;;  %v140_v2 = vld [vmem:[%s678_s1 + $0x110] sm:$0xff]  ;;  %v107_v8 = vld [vmem:[%s678_s1 + $0x8] sm:$0xff]  ;;  %v106_v13 = vld [vmem:[%s678_s1] sm:$0xff] }
  0x13   :  { %442 = vmatpush3.msra.mxu1 %v146_v24  ;;  %380 = vmatpush3.msra.mxu0 %v113_v26  ;;  %v45_v58 = vrot.slane %v37_v51, 7  ;;  %v53_v59 = vrot.slane %v37_v51, 1  ;;  %v54_v61 = vrot.slane %v38_v53, 1  ;;  %v46_v62 = vrot.slane %v38_v53, 7  ;;  %v139_v9 = vld [vmem:[%s678_s1 + $0x108] sm:$0xff]  ;;  %v138_v14 = vld [vmem:[%s678_s1 + $0x100] sm:$0xff] }
  0x14   :  { %443 = vmatprep.subr.mxu1 %v145_v28  ;;  %381 = vmatprep.subr.mxu0 %v128_v27  ;;  %v75_v63 = vrot.slane %v68_v54, 7  ;;  %v82_v0 = vrot.slane %v68_v54, 1  ;;  %v83_v3 = vrot.slane %v621_v55, 1  ;;  %v76_v4 = vrot.slane %v621_v55, 7  ;;  %v360_v25 = vld [vmem:[%s681_s3] ss:$0 sm:$0xff] }
  0x15   :  { %444 = vmatpush3.msra.mxu1 %v145_v28  ;;  %382 = vmatpush3.msra.mxu0 %v112_v29  ;;  %50 = vst [vmem:[#allocation3] sm:$0xfe] %v45_v58  ;;  %v55_v6 = vsel %vm52_vm0, %v53_v59, %v54_v61  ;;  %59 = vst [vmem:[#allocation3 + $0x28] sm:$0x7f] %v54_v61  ;;  %v47_v7 = vsel %vm44_vm1, %v45_v58, %v46_v62 }
  0x16   :  { %445 = vmatprep.subr.mxu1 %v144_v31  ;;  %383 = vmatprep.subr.mxu0 %v127_v38  ;;  %80 = vst [vmem:[#allocation3 + $0x30] sm:$0xfe] %v75_v63  ;;  %v84_v10 = vsel %vm52_vm0, %v82_v0, %v83_v3  ;;  %88 = vst [vmem:[#allocation3 + $0x58] sm:$0x7f] %v83_v3  ;;  %v77_v11 = vsel %vm44_vm1, %v75_v63, %v76_v4 }
  0x17   :  { %446 = vmatpush3.msra.mxu1 %v144_v31  ;;  %384 = vmatpush3.msra.mxu0 %v111_v42 }
  0x18   :  { %447 = vmatprep.subr.mxu1 %v143_v43  ;;  %385 = vmatprep.subr.mxu0 %v126_v45 }
  0x19   :  { %448 = vmatpush3.msra.mxu1 %v143_v43  ;;  %386 = vmatpush3.msra.mxu0 %v110_v49 }
  0x1a   :  { %449 = vmatprep.subr.mxu1 %v142_v50  ;;  %387 = vmatprep.subr.mxu0 %v125_v52 }
  0x1b   :  { %450 = vmatpush3.msra.mxu1 %v142_v50  ;;  %388 = vmatpush3.msra.mxu0 %v109_v56 }
  0x1c   :  { %451 = vmatprep.subr.mxu1 %v141_v57  ;;  %389 = vmatprep.subr.mxu0 %v124_v60  ;;  %v94_v15 = vld [vmem:[#allocation3] sm:$0xff]  ;;  %v99_v16 = vld [vmem:[#allocation3 + $0x28] sm:$0xff] }
  0x1d   :  { %452 = vmatpush3.msra.mxu1 %v141_v57  ;;  %390 = vmatpush3.msra.mxu0 %v108_v1  ;;  %v105_v17 = vld [vmem:[#allocation3 + $0x58] sm:$0xff]  ;;  %v100_v18 = vld [vmem:[#allocation3 + $0x30] sm:$0xff] }
  0x1e   :  { %453 = vmatprep.subr.mxu1 %v140_v2  ;;  %391 = vmatprep.subr.mxu0 %v123_v5 }
  0x1f   :  { %454 = vmatpush3.msra.mxu1 %v140_v2  ;;  %392 = vmatpush3.msra.mxu0 %v107_v8 }
  0x20   :  { %455 = vmatprep.subr.mxu1 %v139_v9  ;;  %393 = vmatprep.subr.mxu0 %v122_v12 }
  0x21   :  { %218 = vmatprep.mubr.f32.mxu0 %v37_v51  ;;  %394 = vmatpush3.msra.mxu0 %v106_v13 }
  0x22   :  { %456 = vmatpush3.msra.mxu1 %v139_v9  ;;  %219 = vmatmul.mubr.f32.vlgmr.msra.gmra.mxu0 %v94_v15 }
  0x23   :  { %457 = vmatprep.subr.mxu1 %v138_v14  ;;  %459 = vmatprep.mubr.f32.mxu1 %v55_v6 }
  0x24   :  { %458 = vmatpush3.msra.mxu1 %v138_v14  ;;  %223 = vmatprep.mubr.f32.mxu0 %v38_v53 }
  0x25   :  { %460 = vmatmul.mubr.f32.vlgmr.msra.gmra.mxu1 %v99_v16 }
  0x26   :  { %462 = vmatprep.mubr.f32.mxu1 %v84_v10  ;;  %224 = vmatmul.mubr.f32.gmra.mxu0 %v47_v7 }
  0x27   :  { %228 = vmatprep.mubr.f32.mxu0 %v68_v54 }
  0x29   :  { %463 = vmatmul.mubr.f32.gmra.mxu1 %v105_v17 }
  0x2a   :  { %229 = vmatmul.mubr.f32.gmra.mxu0 %v100_v18 }
  0x2b   :  { %233 = vmatprep.mubr.f32.mxu0 %v621_v55 }
  0x2e   :  { %234 = vmatmul.mubr.f32.gmra.mxu0 %v77_v11 }
  0xe2   :  { %v395_v19 = vpop.f32.mrf.mxu0 }
  0xe4   :  { %v396_v20 = vpop.f32.mrf.mxu0 }
  0xe5   :  { %v461_v21 = vpop.f32.mrf.mxu1  ;;  %v397_v22 = vadd.f32 %v396_v20, %v395_v19 }
  0xe6   :  { %v398_v23 = vpop.f32.mrf.mxu0 }
  0xe7   :  { %v305_v24 = vpop.f32.mrf.mxu1 }
  0xe8   :  { %v306_v26 = vadd.f32 %v397_v22, %v305_v24  ;;  %v399_v27 = vpop.f32.mrf.mxu0 }
  0xe9   :  { %v464_v28 = vpop.f32.mrf.mxu1  ;;  %v400_v30 = vadd.f32 %v399_v27, %v398_v23 }
  0xea   :  { %v341_v29 = vadd.f32 %v360_v25, %v306_v26  ;;  %v401_v31 = vpop.f32.mrf.mxu0 }
  0xeb   :  { %v311_v32 = vadd.f32 %v461_v21, %v400_v30  ;;  %v315_v34 = vpop.f32.mrf.mxu1 }
  0xec   :  { %343 = vst [vmem:[%s682_s4] sm:$0xff] %v341_v29  ;;  %v402_v33 = vpop.f32.mrf.mxu0 }
  0xed   :  { %v342_v35 = vadd.f32 %v360_v25, %v311_v32  ;;  %v403_v36 = vadd.f32 %v402_v33, %v401_v31 }
  0xee   :  { %v404_v37 = vpop.f32.mrf.mxu0 }
  0xef   :  { %344 = vst [vmem:[%s682_s4 + $0x8] sm:$0xff] %v342_v35  ;;  %v316_v38 = vadd.f32 %v403_v36, %v315_v34 }
  0xf0   :  { %v405_v39 = vpop.f32.mrf.mxu0 }
  0xf1   :  { %v347_v40 = vadd.f32 %v360_v25, %v316_v38  ;;  %v406_v41 = vadd.f32 %v405_v39, %v404_v37 }
  0xf3   :  { %361 = vst [vmem:[%s682_s4 + $0x10] sm:$0xff] %v347_v40  ;;  %v321_v42 = vadd.f32 %v464_v28, %v406_v41 }
  0xf5   :  { %v348_v43 = vadd.f32 %v360_v25, %v321_v42 }
  0xf7   :  { %362 = vst [vmem:[%s682_s4 + $0x18] sm:$0xff] %v348_v43 }

// kernel: _lambda_.3
= control target key start
LH: loop header
LB: loop body
LE: loop exit
PB: predicated region body
PF: predicated region fallthrough
CT: control target
= control target key end

     0   :  { %v890_v3 = vmov 0.0   ;;  %vm61_vm0 = vcmask 1046528   ;;  %vm53_vm1 = vcmask 1040384   ;;  %s1346_s2 = inlined_call_operand.vmem [shape: f32[384,128], index: 2, kind: input, shape index: {}]   ;;  %s1347_s4 = inlined_call_operand.vmem [shape: f32[2,128], index: 4, kind: input, shape index: {}]   ;;  %s1348_s0 = inlined_call_operand.vmem [shape: f32[2,16,128], index: 0, kind: input, shape index: {}]   ;;  %s1349_s3 = inlined_call_operand.vmem [shape: f32[384,128], index: 3, kind: input, shape index: {}]   ;;  %s1350_s5 = inlined_call_operand.vmem [shape: f32[2,128], index: 5, kind: input, shape index: {}]   ;;  %s1351_s1 = inlined_call_operand.vmem [shape: f32[2,16,128], index: 1, kind: input, shape index: {}]   ;;  %s1352_s6 = inlined_call_operand.vmem [shape: f32[1,128], index: 6, kind: input, shape index: {}]   ;;  %s1353_s7 = inlined_call_operand.vmem [shape: f32[2,16,128], index: 7, kind: output, shape index: {}]  }
   0x1   :  { %v146_v0 = vld [vmem:[%s1346_s2 + $0xf8] sm:$0xff]  ;;  %v145_v2 = vld [vmem:[%s1346_s2 + $0xf0] sm:$0xff]  ;;  %50 = vst [vmem:[#allocation3] sm:$0x1] %v890_v3  ;;  %69 = vst [vmem:[#allocation3 + $0x2f] sm:$0x1] %v890_v3 }
   0x2   :  { %v130_v1 = vld [vmem:[%s1346_s2 + $0x78] sm:$0xff]  ;;  %81 = vst [vmem:[#allocation3 + $0x30] sm:$0x1] %v890_v3  ;;  %98 = vst [vmem:[#allocation3 + $0x5f] sm:$0x1] %v890_v3  ;;  %685 = vmatprep.subr.mxu0 %v146_v0  ;;  %v129_v5 = vld [vmem:[%s1346_s2 + $0x70] sm:$0xff] }
   0x3   :  { %361 = vst [vmem:[#allocation4] sm:$0x1] %v890_v3  ;;  %378 = vst [vmem:[#allocation4 + $0x2f] sm:$0x1] %v890_v3  ;;  %v162_v4 = vld [vmem:[%s1346_s2 + $0x178] sm:$0xff]  ;;  %686 = vmatpush3.msra.mxu0 %v130_v1  ;;  %v144_v6 = vld [vmem:[%s1346_s2 + $0xe8] sm:$0xff] }
   0x4   :  { %390 = vst [vmem:[#allocation4 + $0x30] sm:$0x1] %v890_v3  ;;  %407 = vst [vmem:[#allocation4 + $0x5f] sm:$0x1] %v890_v3  ;;  %813 = vmatprep.subr.mxu1 %v162_v4  ;;  %v161_v7 = vld [vmem:[%s1346_s2 + $0x170] sm:$0xff]  ;;  %687 = vmatprep.subr.mxu0 %v145_v2  ;;  %v128_v8 = vld [vmem:[%s1346_s2 + $0x68] sm:$0xff] }
   0x5   :  { %814 = vmatpush3.msra.mxu1 %v162_v4  ;;  %v160_v9 = vld [vmem:[%s1346_s2 + $0x168] sm:$0xff]  ;;  %688 = vmatpush3.msra.mxu0 %v129_v5  ;;  %v143_v10 = vld [vmem:[%s1346_s2 + $0xe0] sm:$0xff]  ;;  %v142_v13 = vld [vmem:[%s1346_s2 + $0xd8] sm:$0xff] }
   0x6   :  { %815 = vmatprep.subr.mxu1 %v161_v7  ;;  %689 = vmatprep.subr.mxu0 %v144_v6  ;;  %v127_v11 = vld [vmem:[%s1346_s2 + $0x60] sm:$0xff]  ;;  %v126_v14 = vld [vmem:[%s1346_s2 + $0x58] sm:$0xff]  ;;  %v141_v16 = vld [vmem:[%s1346_s2 + $0xd0] sm:$0xff] }
   0x7   :  { %816 = vmatpush3.msra.mxu1 %v161_v7  ;;  %v159_v12 = vld [vmem:[%s1346_s2 + $0x160] sm:$0xff]  ;;  %690 = vmatpush3.msra.mxu0 %v128_v8  ;;  %v158_v15 = vld [vmem:[%s1346_s2 + $0x158] sm:$0xff]  ;;  %v125_v17 = vld [vmem:[%s1346_s2 + $0x50] sm:$0xff] }
   0x8   :  { %817 = vmatprep.subr.mxu1 %v160_v9  ;;  %691 = vmatprep.subr.mxu0 %v143_v10  ;;  %v157_v18 = vld [vmem:[%s1346_s2 + $0x150] sm:$0xff]  ;;  %v140_v19 = vld [vmem:[%s1346_s2 + $0xc8] sm:$0xff]  ;;  %v139_v22 = vld [vmem:[%s1346_s2 + $0xc0] sm:$0xff] }
   0x9   :  { %818 = vmatpush3.msra.mxu1 %v160_v9  ;;  %692 = vmatpush3.msra.mxu0 %v127_v11  ;;  %v124_v20 = vld [vmem:[%s1346_s2 + $0x48] sm:$0xff]  ;;  %v123_v23 = vld [vmem:[%s1346_s2 + $0x40] sm:$0xff]  ;;  %v138_v25 = vld [vmem:[%s1346_s2 + $0xb8] sm:$0xff] }
   0xa   :  { %819 = vmatprep.subr.mxu1 %v159_v12  ;;  %693 = vmatprep.subr.mxu0 %v142_v13  ;;  %v156_v21 = vld [vmem:[%s1346_s2 + $0x148] sm:$0xff]  ;;  %v155_v24 = vld [vmem:[%s1346_s2 + $0x140] sm:$0xff]  ;;  %v122_v26 = vld [vmem:[%s1346_s2 + $0x38] sm:$0xff] }
   0xb   :  { %820 = vmatpush3.msra.mxu1 %v159_v12  ;;  %694 = vmatpush3.msra.mxu0 %v126_v14  ;;  %v154_v27 = vld [vmem:[%s1346_s2 + $0x138] sm:$0xff]  ;;  %v1015_v28 = vld [vmem:[%s1347_s4] ss:$0 sm:$0xff]  ;;  %v137_v29 = vld [vmem:[%s1346_s2 + $0xb0] sm:$0xff] }
   0xc   :  { %821 = vmatprep.subr.mxu1 %v158_v15  ;;  %695 = vmatprep.subr.mxu0 %v141_v16  ;;  %v1023_v30 = vld [vmem:[%s1347_s4 + $0x1] ss:$0 sm:$0xff]  ;;  %v121_v32 = vld [vmem:[%s1346_s2 + $0x30] sm:$0xff]  ;;  %v33_v35 = vld [vmem:[%s1348_s0 + $0x8] sm:$0xff] }
   0xd   :  { %822 = vmatpush3.msra.mxu1 %v158_v15  ;;  %696 = vmatpush3.msra.mxu0 %v125_v17  ;;  %v32_v31 = vld [vmem:[%s1348_s0] sm:$0xff]  ;;  %v153_v33 = vld [vmem:[%s1346_s2 + $0x130] sm:$0xff]  ;;  %v136_v36 = vld [vmem:[%s1346_s2 + $0xa8] sm:$0xff]  ;;  %v39_v37 = vmul.f32 %v1015_v28, %v33_v35 }
   0xe   :  { %823 = vmatprep.subr.mxu1 %v157_v18  ;;  %697 = vmatprep.subr.mxu0 %v140_v19  ;;  %v38_v34 = vmul.f32 %v1015_v28, %v32_v31  ;;  %v120_v38 = vld [vmem:[%s1346_s2 + $0x28] sm:$0xff]  ;;  %v135_v41 = vld [vmem:[%s1346_s2 + $0xa0] sm:$0xff]  ;;  %v134_v46 = vld [vmem:[%s1346_s2 + $0x98] sm:$0xff] }
   0xf   :  { %824 = vmatpush3.msra.mxu1 %v157_v18  ;;  %698 = vmatpush3.msra.mxu0 %v124_v20  ;;  %v152_v39 = vld [vmem:[%s1346_s2 + $0x128] sm:$0xff]  ;;  %v45_v42 = vadd.f32 %v1023_v30, %v39_v37  ;;  %v119_v43 = vld [vmem:[%s1346_s2 + $0x20] sm:$0xff]  ;;  %v118_v48 = vld [vmem:[%s1346_s2 + $0x18] sm:$0xff] }
  0x10   :  { %825 = vmatprep.subr.mxu1 %v156_v21  ;;  %699 = vmatprep.subr.mxu0 %v139_v22  ;;  %v44_v40 = vadd.f32 %v1023_v30, %v38_v34  ;;  %v151_v44 = vld [vmem:[%s1346_s2 + $0x120] sm:$0xff]  ;;  %v150_v49 = vld [vmem:[%s1346_s2 + $0x118] sm:$0xff]  ;;  %v133_v52 = vld [vmem:[%s1346_s2 + $0x90] sm:$0xff] }
  0x11   :  { %826 = vmatpush3.msra.mxu1 %v156_v21  ;;  %700 = vmatpush3.msra.mxu0 %v123_v23  ;;  %v1062_v47 = vmax.f32 %v45_v42, 0.0  ;;  %v117_v55 = vld [vmem:[%s1346_s2 + $0x10] sm:$0xff]  ;;  %v132_v57 = vld [vmem:[%s1346_s2 + $0x88] sm:$0xff]  ;;  %v131_v63 = vld [vmem:[%s1346_s2 + $0x80] sm:$0xff] }
  0x12   :  { %827 = vmatprep.subr.mxu1 %v155_v24  ;;  %701 = vmatprep.subr.mxu0 %v138_v25  ;;  %v46_v45 = vmax.f32 %v44_v40, 0.0  ;;  %v149_v56 = vld [vmem:[%s1346_s2 + $0x110] sm:$0xff]  ;;  %v116_v60 = vld [vmem:[%s1346_s2 + $0x8] sm:$0xff]  ;;  %v115_v1 = vld [vmem:[%s1346_s2] sm:$0xff] }
  0x13   :  { %828 = vmatpush3.msra.mxu1 %v155_v24  ;;  %702 = vmatpush3.msra.mxu0 %v122_v26  ;;  %v63_v53 = vrot.slane %v1062_v47, 1  ;;  %v55_v54 = vrot.slane %v1062_v47, 7  ;;  %v148_v61 = vld [vmem:[%s1346_s2 + $0x108] sm:$0xff]  ;;  %v676_v62 = vld [vmem:[%s1348_s0 + $0x10] sm:$0xff]  ;;  %v677_v2 = vld [vmem:[%s1348_s0 + $0x18] sm:$0xff] }
  0x14   :  { %829 = vmatprep.subr.mxu1 %v154_v27  ;;  %703 = vmatprep.subr.mxu0 %v137_v29  ;;  %v54_v50 = vrot.slane %v46_v45, 7  ;;  %v62_v51 = vrot.slane %v46_v45, 1  ;;  %v73_v0 = vmul.f32 %v676_v62, %v1015_v28  ;;  %v147_v3 = vld [vmem:[%s1346_s2 + $0x100] sm:$0xff]  ;;  %v74_v5 = vmul.f32 %v677_v2, %v1015_v28  ;;  %v455_v6 = vld [vmem:[%s1349_s3 + $0xf8] sm:$0xff]  ;;  %v454_v9 = vld [vmem:[%s1349_s3 + $0xf0] sm:$0xff] }
  0x15   :  { %830 = vmatpush3.msra.mxu1 %v154_v27  ;;  %704 = vmatpush3.msra.mxu0 %v121_v32  ;;  %68 = vst [vmem:[#allocation3 + $0x28] sm:$0x7f] %v63_v53  ;;  %v439_v7 = vld [vmem:[%s1349_s3 + $0x78] sm:$0xff]  ;;  %v438_v14 = vld [vmem:[%s1349_s3 + $0x70] sm:$0xff]  ;;  %v453_v15 = vld [vmem:[%s1349_s3 + $0xe8] sm:$0xff] }
  0x16   :  { %831 = vmatprep.subr.mxu1 %v153_v33  ;;  %705 = vmatprep.subr.mxu0 %v136_v36  ;;  %59 = vst [vmem:[#allocation3] sm:$0xfe] %v54_v50  ;;  %v64_v58 = vsel %vm61_vm0, %v62_v51, %v63_v53  ;;  %v1086_v59 = vsel %vm53_vm1, %v54_v50, %v55_v54  ;;  %v471_v10 = vld [vmem:[%s1349_s3 + $0x178] sm:$0xff]  ;;  %v470_v16 = vld [vmem:[%s1349_s3 + $0x170] sm:$0xff]  ;;  %v678_v20 = vld [vmem:[%s1350_s5] ss:$0 sm:$0xff] }
  0x17   :  { %832 = vmatpush3.msra.mxu1 %v153_v33  ;;  %706 = vmatpush3.msra.mxu0 %v120_v38  ;;  %v75_v4 = vadd.f32 %v1023_v30, %v73_v0  ;;  %v76_v12 = vadd.f32 %v1023_v30, %v74_v5  ;;  %v437_v21 = vld [vmem:[%s1349_s3 + $0x68] sm:$0xff]  ;;  %v679_v22 = vld [vmem:[%s1350_s5 + $0x1] ss:$0 sm:$0xff]  ;;  %v680_v28 = vld [vmem:[%s1351_s1 + $0x10] sm:$0xff] }
  0x18   :  { %833 = vmatprep.subr.mxu1 %v152_v39  ;;  %707 = vmatprep.subr.mxu0 %v135_v41  ;;  %v343_v23 = vld [vmem:[%s1351_s1] sm:$0xff]  ;;  %v344_v27 = vld [vmem:[%s1351_s1 + $0x8] sm:$0xff]  ;;  %v681_v29 = vld [vmem:[%s1351_s1 + $0x18] sm:$0xff]  ;;  %v382_v31 = vmul.f32 %v680_v28, %v678_v20 }
  0x19   :  { %834 = vmatpush3.msra.mxu1 %v152_v39  ;;  %708 = vmatpush3.msra.mxu0 %v119_v43  ;;  %v1124_v11 = vmax.f32 %v75_v4, 0.0  ;;  %v1137_v18 = vmax.f32 %v76_v12, 0.0  ;;  %v349_v26 = vmul.f32 %v678_v20, %v343_v23  ;;  %v350_v30 = vmul.f32 %v678_v20, %v344_v27  ;;  %v452_v33 = vld [vmem:[%s1349_s3 + $0xe0] sm:$0xff]  ;;  %v469_v34 = vld [vmem:[%s1349_s3 + $0x168] sm:$0xff]  ;;  %v430_v12 = vld [vmem:[%s1349_s3 + $0x30] sm:$0xff] }
  0x1a   :  { %835 = vmatprep.subr.mxu1 %v151_v44  ;;  %709 = vmatprep.subr.mxu0 %v134_v46  ;;  %v383_v32 = vmul.f32 %v681_v29, %v678_v20  ;;  %v384_v39 = vadd.f32 %v679_v22, %v382_v31  ;;  %v436_v41 = vld [vmem:[%s1349_s3 + $0x60] sm:$0xff]  ;;  %v433_v0 = vld [vmem:[%s1349_s3 + $0x48] sm:$0xff]  ;;  %v427_v23 = vld [vmem:[%s1349_s3 + $0x18] sm:$0xff] }
  0x1b   :  { %836 = vmatpush3.msra.mxu1 %v151_v44  ;;  %710 = vmatpush3.msra.mxu0 %v118_v48  ;;  %v84_v17 = vrot.slane %v1124_v11, 7  ;;  %v91_v19 = vrot.slane %v1124_v11, 1  ;;  %v92_v24 = vrot.slane %v1137_v18, 1  ;;  %v85_v25 = vrot.slane %v1137_v18, 7  ;;  %v468_v42 = vld [vmem:[%s1349_s3 + $0x160] sm:$0xff]  ;;  %v451_v44 = vld [vmem:[%s1349_s3 + $0xd8] sm:$0xff] }
  0x1c   :  { %837 = vmatprep.subr.mxu1 %v150_v49  ;;  %711 = vmatprep.subr.mxu0 %v133_v52  ;;  %v108_v13 = vld [vmem:[#allocation3 + $0x28] sm:$0xff]  ;;  %v355_v37 = vadd.f32 %v679_v22, %v349_v26  ;;  %v356_v38 = vadd.f32 %v679_v22, %v350_v30  ;;  %v385_v40 = vadd.f32 %v679_v22, %v383_v32  ;;  %v1189_v46 = vmax.f32 %v384_v39, 0.0  ;;  %v435_v48 = vld [vmem:[%s1349_s3 + $0x58] sm:$0xff]  ;;  %v450_v52 = vld [vmem:[%s1349_s3 + $0xd0] sm:$0xff] }
  0x1d   :  { %838 = vmatpush3.msra.mxu1 %v150_v49  ;;  %712 = vmatpush3.msra.mxu0 %v117_v55  ;;  %v103_v8 = vld [vmem:[#allocation3] sm:$0xff]  ;;  %89 = vst [vmem:[#allocation3 + $0x30] sm:$0xfe] %v84_v17  ;;  %v1170_v35 = vsel %vm61_vm0, %v91_v19, %v92_v24  ;;  %97 = vst [vmem:[#allocation3 + $0x58] sm:$0x7f] %v92_v24  ;;  %v1173_v36 = vsel %vm53_vm1, %v84_v17, %v85_v25  ;;  %v467_v49 = vld [vmem:[%s1349_s3 + $0x158] sm:$0xff] }
  0x1e   :  { %839 = vmatprep.subr.mxu1 %v149_v56  ;;  %713 = vmatprep.subr.mxu0 %v132_v57  ;;  %v1182_v43 = vmax.f32 %v355_v37, 0.0  ;;  %v393_v55 = vrot.slane %v1189_v46, 7  ;;  %v434_v57 = vld [vmem:[%s1349_s3 + $0x50] sm:$0xff]  ;;  %v448_v4 = vld [vmem:[%s1349_s3 + $0xc0] sm:$0xff]  ;;  %v461_v19 = vld [vmem:[%s1349_s3 + $0x128] sm:$0xff] }
  0x1f   :  { %840 = vmatpush3.msra.mxu1 %v149_v56  ;;  %714 = vmatpush3.msra.mxu0 %v116_v60  ;;  %v400_v56 = vrot.slane %v1189_v46, 1  ;;  %v432_v5 = vld [vmem:[%s1349_s3 + $0x40] sm:$0xff]  ;;  %v443_v22 = vld [vmem:[%s1349_s3 + $0x98] sm:$0xff]  ;;  %v442_v24 = vld [vmem:[%s1349_s3 + $0x90] sm:$0xff] }
  0x20   :  { %841 = vmatprep.subr.mxu1 %v148_v61  ;;  %715 = vmatprep.subr.mxu0 %v131_v63  ;;  %v364_v50 = vrot.slane %v1182_v43, 7  ;;  %v371_v51 = vrot.slane %v1182_v43, 1  ;;  %398 = vst [vmem:[#allocation4 + $0x30] sm:$0xfe] %v393_v55  ;;  %v444_v17 = vld [vmem:[%s1349_s3 + $0xa0] sm:$0xff]  ;;  %v459_v25 = vld [vmem:[%s1349_s3 + $0x118] sm:$0xff] }
  0x21   :  { %227 = vmatprep.mubr.f32.mxu0 %v46_v45  ;;  %716 = vmatpush3.msra.mxu0 %v115_v1  ;;  %v1187_v45 = vmax.f32 %v356_v38, 0.0  ;;  %v465_v1 = vld [vmem:[%s1349_s3 + $0x148] sm:$0xff]  ;;  %v428_v20 = vld [vmem:[%s1349_s3 + $0x20] sm:$0xff]  ;;  %v426_v26 = vld [vmem:[%s1349_s3 + $0x10] sm:$0xff] }
  0x22   :  { %842 = vmatpush3.msra.mxu1 %v148_v61  ;;  %228 = vmatmul.mubr.f32.vlgmr.msra.gmra.mxu0 %v103_v8  ;;  %369 = vst [vmem:[#allocation4] sm:$0xfe] %v364_v50  ;;  %v449_v61 = vld [vmem:[%s1349_s3 + $0xc8] sm:$0xff]  ;;  %v431_v8 = vld [vmem:[%s1349_s3 + $0x38] sm:$0xff]  ;;  %v440_v29 = vld [vmem:[%s1349_s3 + $0x80] sm:$0xff] }
  0x23   :  { %843 = vmatprep.subr.mxu1 %v147_v3  ;;  %749 = vmatprep.subr.mxu0 %v455_v6  ;;  %v372_v53 = vrot.slane %v1187_v45, 1  ;;  %v365_v54 = vrot.slane %v1187_v45, 7  ;;  %v464_v6 = vld [vmem:[%s1349_s3 + $0x140] sm:$0xff]  ;;  %v441_v27 = vld [vmem:[%s1349_s3 + $0x88] sm:$0xff] }
  0x24   :  { %844 = vmatpush3.msra.mxu1 %v147_v3  ;;  %845 = vmatprep.mubr.f32.mxu1 %v64_v58  ;;  %v466_v58 = vld [vmem:[%s1349_s3 + $0x150] sm:$0xff]  ;;  %v425_v28 = vld [vmem:[%s1349_s3 + $0x8] sm:$0xff]  ;;  %v424_v31 = vld [vmem:[%s1349_s3] sm:$0xff] }
  0x25   :  { %750 = vmatpush3.msra.mxu0 %v439_v7  ;;  %846 = vmatmul.mubr.f32.vlgmr.msra.gmra.mxu1 %v108_v13  ;;  %v1221_v62 = vsel %vm61_vm0, %v371_v51, %v372_v53  ;;  %377 = vst [vmem:[#allocation4 + $0x28] sm:$0x7f] %v372_v53  ;;  %v1224_v63 = vsel %vm53_vm1, %v364_v50, %v365_v54  ;;  %v447_v7 = vld [vmem:[%s1349_s3 + $0xb8] sm:$0xff]  ;;  %v462_v13 = vld [vmem:[%s1349_s3 + $0x130] sm:$0xff]  ;;  %v457_v30 = vld [vmem:[%s1349_s3 + $0x108] sm:$0xff] }
  0x26   :  { %751 = vmatprep.subr.mxu0 %v454_v9  ;;  %851 = vmatprep.subr.mxu1 %v471_v10  ;;  %v463_v9 = vld [vmem:[%s1349_s3 + $0x138] sm:$0xff] }
  0x27   :  { %752 = vmatpush3.msra.mxu0 %v438_v14  ;;  %852 = vmatpush3.msra.mxu1 %v471_v10  ;;  %v446_v10 = vld [vmem:[%s1349_s3 + $0xb0] sm:$0xff]  ;;  %v445_v14 = vld [vmem:[%s1349_s3 + $0xa8] sm:$0xff] }
  0x28   :  { %753 = vmatprep.subr.mxu0 %v453_v15  ;;  %853 = vmatprep.subr.mxu1 %v470_v16  ;;  %v429_v15 = vld [vmem:[%s1349_s3 + $0x28] sm:$0xff] }
  0x29   :  { %754 = vmatpush3.msra.mxu0 %v437_v21  ;;  %854 = vmatpush3.msra.mxu1 %v470_v16  ;;  %v109_v16 = vld [vmem:[#allocation3 + $0x30] sm:$0xff]  ;;  %v114_v21 = vld [vmem:[#allocation3 + $0x58] sm:$0xff]  ;;  %v412_v32 = vld [vmem:[#allocation4] sm:$0xff] }
  0x2a   :  { %232 = vmatprep.mubr.f32.mxu0 %v1062_v47  ;;  %755 = vmatprep.subr.mxu0 %v452_v33  ;;  %v1191_v47 = vmax.f32 %v385_v40, 0.0  ;;  %v456_v33 = vld [vmem:[%s1349_s3 + $0x100] sm:$0xff] }
  0x2b   :  { %855 = vmatprep.subr.mxu1 %v469_v34  ;;  %233 = vmatmul.mubr.f32.gmra.mxu0 %v1086_v59 }
  0x2c   :  { %856 = vmatpush3.msra.mxu1 %v469_v34  ;;  %756 = vmatpush3.msra.mxu0 %v436_v41  ;;  %v401_v59 = vrot.slane %v1191_v47, 1  ;;  %v394_v60 = vrot.slane %v1191_v47, 7  ;;  %v417_v34 = vld [vmem:[#allocation4 + $0x28] sm:$0xff] }
  0x2d   :  { %857 = vmatprep.subr.mxu1 %v468_v42  ;;  %757 = vmatprep.subr.mxu0 %v451_v44 }
  0x2e   :  { %858 = vmatpush3.msra.mxu1 %v468_v42  ;;  %758 = vmatpush3.msra.mxu0 %v435_v48  ;;  %v1233_v2 = vsel %vm61_vm0, %v400_v56, %v401_v59  ;;  %406 = vst [vmem:[#allocation4 + $0x58] sm:$0x7f] %v401_v59  ;;  %v1236_v3 = vsel %vm53_vm1, %v393_v55, %v394_v60  ;;  %v682_v59 = vld [vmem:[%s1352_s6] ss:$0 sm:$0xff] }
  0x2f   :  { %859 = vmatprep.subr.mxu1 %v467_v49  ;;  %759 = vmatprep.subr.mxu0 %v450_v52 }
  0x30   :  { %860 = vmatpush3.msra.mxu1 %v467_v49  ;;  %760 = vmatpush3.msra.mxu0 %v434_v57 }
  0x31   :  { %861 = vmatprep.subr.mxu1 %v466_v58  ;;  %761 = vmatprep.subr.mxu0 %v449_v61 }
  0x32   :  { %862 = vmatpush3.msra.mxu1 %v466_v58  ;;  %762 = vmatpush3.msra.mxu0 %v433_v0 }
  0x33   :  { %863 = vmatprep.subr.mxu1 %v465_v1  ;;  %763 = vmatprep.subr.mxu0 %v448_v4 }
  0x34   :  { %864 = vmatpush3.msra.mxu1 %v465_v1  ;;  %764 = vmatpush3.msra.mxu0 %v432_v5 }
  0x35   :  { %865 = vmatprep.subr.mxu1 %v464_v6  ;;  %765 = vmatprep.subr.mxu0 %v447_v7 }
  0x36   :  { %866 = vmatpush3.msra.mxu1 %v464_v6  ;;  %766 = vmatpush3.msra.mxu0 %v431_v8 }
  0x37   :  { %867 = vmatprep.subr.mxu1 %v463_v9  ;;  %767 = vmatprep.subr.mxu0 %v446_v10 }
  0x38   :  { %868 = vmatpush3.msra.mxu1 %v463_v9  ;;  %768 = vmatpush3.msra.mxu0 %v430_v12 }
  0x39   :  { %869 = vmatprep.subr.mxu1 %v462_v13  ;;  %769 = vmatprep.subr.mxu0 %v445_v14 }
  0x3a   :  { %237 = vmatprep.mubr.f32.mxu0 %v1124_v11  ;;  %770 = vmatpush3.msra.mxu0 %v429_v15  ;;  %v460_v11 = vld [vmem:[%s1349_s3 + $0x120] sm:$0xff] }
  0x3b   :  { %870 = vmatpush3.msra.mxu1 %v462_v13  ;;  %238 = vmatmul.mubr.f32.gmra.mxu0 %v109_v16 }
  0x3c   :  { %771 = vmatprep.subr.mxu0 %v444_v17  ;;  %871 = vmatprep.subr.mxu1 %v461_v19 }
  0x3d   :  { %848 = vmatprep.mubr.f32.mxu1 %v1170_v35  ;;  %772 = vmatpush3.msra.mxu0 %v428_v20  ;;  %v423_v35 = vld [vmem:[#allocation4 + $0x58] sm:$0xff] }
  0x3e   :  { %872 = vmatpush3.msra.mxu1 %v461_v19  ;;  %773 = vmatprep.subr.mxu0 %v443_v22 }
  0x3f   :  { %849 = vmatmul.mubr.f32.gmra.mxu1 %v114_v21  ;;  %873 = vmatprep.subr.mxu1 %v460_v11 }
  0x40   :  { %242 = vmatprep.mubr.f32.mxu0 %v1137_v18  ;;  %774 = vmatpush3.msra.mxu0 %v427_v23  ;;  %v458_v18 = vld [vmem:[%s1349_s3 + $0x110] sm:$0xff] }
  0x41   :  { %874 = vmatpush3.msra.mxu1 %v460_v11  ;;  %243 = vmatmul.mubr.f32.gmra.mxu0 %v1173_v36  ;;  %v418_v36 = vld [vmem:[#allocation4 + $0x30] sm:$0xff] }
  0x42   :  { %775 = vmatprep.subr.mxu0 %v442_v24  ;;  %875 = vmatprep.subr.mxu1 %v459_v25 }
  0x43   :  { %776 = vmatpush3.msra.mxu0 %v426_v26  ;;  %876 = vmatpush3.msra.mxu1 %v459_v25 }
  0x44   :  { %777 = vmatprep.subr.mxu0 %v441_v27  ;;  %877 = vmatprep.subr.mxu1 %v458_v18 }
  0x45   :  { %778 = vmatpush3.msra.mxu0 %v425_v28  ;;  %878 = vmatpush3.msra.mxu1 %v458_v18 }
  0x46   :  { %779 = vmatprep.subr.mxu0 %v440_v29  ;;  %879 = vmatprep.subr.mxu1 %v457_v30 }
  0x47   :  { %780 = vmatpush3.msra.mxu0 %v424_v31  ;;  %536 = vmatprep.mubr.f32.mxu0 %v1182_v43 }
  0x48   :  { %880 = vmatpush3.msra.mxu1 %v457_v30  ;;  %537 = vmatmul.mubr.f32.vlgmr.msra.gmra.mxu0 %v412_v32 }
  0x49   :  { %881 = vmatprep.subr.mxu1 %v456_v33  ;;  %883 = vmatprep.mubr.f32.mxu1 %v1221_v62 }
  0x4a   :  { %882 = vmatpush3.msra.mxu1 %v456_v33  ;;  %541 = vmatprep.mubr.f32.mxu0 %v1187_v45 }
  0x4b   :  { %884 = vmatmul.mubr.f32.vlgmr.msra.gmra.mxu1 %v417_v34 }
  0x4c   :  { %886 = vmatprep.mubr.f32.mxu1 %v1233_v2  ;;  %542 = vmatmul.mubr.f32.gmra.mxu0 %v1224_v63 }
  0x4d   :  { %546 = vmatprep.mubr.f32.mxu0 %v1189_v46 }
  0x4f   :  { %887 = vmatmul.mubr.f32.gmra.mxu1 %v423_v35 }
  0x50   :  { %547 = vmatmul.mubr.f32.gmra.mxu0 %v418_v36 }
  0x51   :  { %551 = vmatprep.mubr.f32.mxu0 %v1191_v47 }
  0x54   :  { %552 = vmatmul.mubr.f32.gmra.mxu0 %v1236_v3 }
  0xe2   :  { %v717_v37 = vpop.f32.mrf.mxu0 }
  0xe4   :  { %v718_v38 = vpop.f32.mrf.mxu0 }
  0xe5   :  { %v847_v42 = vpop.f32.mrf.mxu1  ;;  %v719_v51 = vadd.f32 %v718_v38, %v717_v37 }
  0xe7   :  { %v314_v44 = vpop.f32.mrf.mxu1 }
  0xe8   :  { %v315_v56 = vadd.f32 %v719_v51, %v314_v44 }
  0xeb   :  { %v720_v39 = vpop.f32.mrf.mxu0 }
  0xed   :  { %v721_v40 = vpop.f32.mrf.mxu0 }
  0xee   :  { %v722_v57 = vadd.f32 %v721_v40, %v720_v39 }
  0xf0   :  { %v320_v1 = vadd.f32 %v847_v42, %v722_v57 }
  0xfb   :  { %v723_v41 = vpop.f32.mrf.mxu0 }
  0xfd   :  { %v724_v43 = vpop.f32.mrf.mxu0 }
  0xfe   :  { %v725_v2 = vadd.f32 %v724_v43, %v723_v41 }
  0xff   :  { %v850_v48 = vpop.f32.mrf.mxu1 }
 0x101   :  { %v726_v45 = vpop.f32.mrf.mxu0  ;;  %v324_v50 = vpop.f32.mrf.mxu1 }
 0x102   :  { %v325_v10 = vadd.f32 %v725_v2, %v324_v50 }
 0x103   :  { %v727_v49 = vpop.f32.mrf.mxu0 }
 0x104   :  { %v728_v12 = vadd.f32 %v727_v49, %v726_v45 }
 0x106   :  { %v330_v19 = vadd.f32 %v850_v48, %v728_v12 }
 0x108   :  { %v781_v46 = vpop.f32.mrf.mxu0 }
 0x10a   :  { %v782_v52 = vpop.f32.mrf.mxu0 }
 0x10b   :  { %v885_v53 = vpop.f32.mrf.mxu1  ;;  %v783_v54 = vadd.f32 %v782_v52, %v781_v46 }
 0x10c   :  { %v784_v47 = vpop.f32.mrf.mxu0 }
 0x10d   :  { %v623_v55 = vpop.f32.mrf.mxu1 }
 0x10e   :  { %v624_v58 = vadd.f32 %v783_v54, %v623_v55  ;;  %v785_v60 = vpop.f32.mrf.mxu0 }
 0x10f   :  { %v888_v61 = vpop.f32.mrf.mxu1  ;;  %v786_v63 = vadd.f32 %v785_v60, %v784_v47 }
 0x110   :  { %v642_v62 = vadd.f32 %v624_v58, %v315_v56  ;;  %v787_v0 = vpop.f32.mrf.mxu0 }
 0x111   :  { %v629_v4 = vadd.f32 %v885_v53, %v786_v63  ;;  %v633_v6 = vpop.f32.mrf.mxu1 }
 0x112   :  { %v659_v3 = vadd.f32 %v682_v59, %v642_v62  ;;  %v788_v5 = vpop.f32.mrf.mxu0 }
 0x113   :  { %v643_v7 = vadd.f32 %v629_v4, %v320_v1  ;;  %v789_v8 = vadd.f32 %v788_v5, %v787_v0 }
 0x114   :  { %661 = vst [vmem:[%s1353_s7] sm:$0xff] %v659_v3  ;;  %v790_v9 = vpop.f32.mrf.mxu0 }
 0x115   :  { %v660_v13 = vadd.f32 %v682_v59, %v643_v7  ;;  %v634_v14 = vadd.f32 %v789_v8, %v633_v6 }
 0x116   :  { %v791_v15 = vpop.f32.mrf.mxu0 }
 0x117   :  { %662 = vst [vmem:[%s1353_s7 + $0x8] sm:$0xff] %v660_v13  ;;  %v644_v16 = vadd.f32 %v634_v14, %v325_v10  ;;  %v792_v17 = vadd.f32 %v791_v15, %v790_v9 }
 0x119   :  { %v665_v20 = vadd.f32 %v682_v59, %v644_v16  ;;  %v639_v21 = vadd.f32 %v888_v61, %v792_v17 }
 0x11b   :  { %683 = vst [vmem:[%s1353_s7 + $0x10] sm:$0xff] %v665_v20  ;;  %v645_v22 = vadd.f32 %v639_v21, %v330_v19 }
 0x11d   :  { %v666_v11 = vadd.f32 %v682_v59, %v645_v22 }
 0x11f   :  { %684 = vst [vmem:[%s1353_s7 + $0x18] sm:$0xff] %v666_v11 }

</bundles_post_ra>
